<compile_context>
chip_gen: v6e
topology: v6e:2x2x1
jax: 0.10.0
libtpu: 0.0.40
codegen_flags: <defaults>
</compile_context>

<pallas_src>
import functools

import jax
import jax.numpy as jnp
from jax.experimental import pallas as pl
from jax.experimental.pallas import tpu as pltpu


# ------------------------------ helpers ------------------------------------ #

def _round_up(x, m):
    return (x + m - 1) // m * m


# ----------------------------- Pallas kernel ------------------------------- #

def _gru_recurrent_kernel(gi_ref, whh_ref, bhn_ref, h0_ref,
                          out_ref, hN_ref, h_scr, *, t_real, unroll):
    """One grid step == Tb time steps of the GRU recurrence for one batch block.

    gi_ref : (Tb, Bk, 3*Hp)      precomputed x_t@W_ih^T + b_ih (+ b_hr/b_hz folded)
    whh_ref: (Hp, 3*Hp)          hidden->gates weights (transposed; f32 or bf16)
    bhn_ref: (1, Hp)   f32       hidden bias of the n gate (kept separate: r scales it)
    h0_ref : (Bk, Hp)  f32       initial hidden state
    out_ref: (Tb, Bk, Hp)        per-step outputs (h_t)
    hN_ref : (Bk, Hp)  f32       final hidden state (full-precision carry)
    h_scr  : (Bk, Hp)  f32       hidden-state carry across time blocks
    """
    t_blk = pl.program_id(1)                    # time-block index (sequential axis)
    Hp = whh_ref.shape[0]
    Tb = gi_ref.shape[0]
    Bk = h_scr.shape[0]

    @pl.when(t_blk == 0)
    def _():
        h_scr[...] = h0_ref[...].astype(jnp.float32)

    w = whh_ref[...]                            # (Hp, 3Hp), VMEM resident
    w_rz = w[:, :2 * Hp]                        # r/z columns, issued first
    w_n = w[:, 2 * Hp:]                         # n columns; r/z EUP work overlaps its drain
    bhn_b = jnp.broadcast_to(bhn_ref[...], (Bk, Hp))   # hoisted: broadcast once per block
    base = t_blk * Tb

    def step(j, h):
        gi = gi_ref[j].astype(jnp.float32)                      # (Bk, 3Hp) f32
        hc = h.astype(w.dtype)
        gh_rz = jnp.dot(hc, w_rz, preferred_element_type=jnp.float32)  # (Bk, 2Hp)
        gh_n = jnp.dot(hc, w_n, preferred_element_type=jnp.float32)    # (Bk, Hp)
        # PyTorch GRU gate order r, z, n; b_ir+b_hr / b_iz+b_hz pre-folded into gi.
        r = jax.nn.sigmoid(gi[:, 0 * Hp:1 * Hp] + gh_rz[:, :Hp])
        z = jax.nn.sigmoid(gi[:, 1 * Hp:2 * Hp] + gh_rz[:, Hp:])
        n = jnp.tanh(gi[:, 2 * Hp:3 * Hp] + r * (gh_n + bhn_b))
        h_new = n + z * (h - n)                                 # == (1-z)*n + z*h
        out_ref[j] = h_new.astype(out_ref.dtype)
        # Padded tail time steps (T rounded up to a multiple of Tb) must not
        # advance the carry; their stored outputs are sliced off in the wrapper.
        return jnp.where(base + j < t_real, h_new, h)

    h_final = jax.lax.fori_loop(0, Tb, step, h_scr[...], unroll=unroll)
    h_scr[...] = h_final
    hN_ref[...] = h_final                       # full-precision final hidden state


# ------------------------------ GRU wrapper --------------------------------- #

def gru_pallas(x_bti, w_ih, w_hh, b_ih, b_hh, h0, *,
               compute_dtype=jnp.float32, max_time_block=128, batch_blocks=1):
    """Single-layer unidirectional GRU (PyTorch param layout), batch_first.

    x_bti: (B, T, I); w_ih: (3H, I); w_hh: (3H, H); b_ih/b_hh: (3H,); h0: (B, H)
    returns (outputs (B, T, H), last_hidden (1, B, H) in f32)
    batch_blocks > 1 enables a leading 'parallel' batch grid axis (v7x 2nd TC).
    """
    B, T, I = x_bti.shape
    H = w_hh.shape[1]
    out_dtype = x_bti.dtype

    # Lane padding of the hidden/gate dim; prefer 256-alignment for larger H
    # (v6e/v7x MXU contraction dim), 128 otherwise (matches v5e MXU exactly).
    Hp = _round_up(H, 128) if H <= 128 else _round_up(H, 256)
    # Sublane padding of the batch dim -> full-vreg loads/stores, unmasked vst.
    sub = 8 if jnp.dtype(compute_dtype).itemsize == 4 else 16
    Bp = _round_up(max(B, 1), sub)

    nb = batch_blocks
    if nb < 1 or Bp % nb != 0 or (Bp // nb) % sub != 0:
        nb = 1
    B_blk = Bp // nb

    # --- parameter repacking: per-gate pad H -> Hp, keep gate order r,z,n ---
    # Padded rows/cols/biases are zero => padded lanes of h stay exactly 0
    # (tanh(0) = 0).  Keep it that way.
    def pad_gates_last(a3):                     # (..., 3, H) -> (..., 3*Hp)
        pad = [(0, 0)] * (a3.ndim - 1) + [(0, Hp - H)]
        return jnp.pad(a3, pad).reshape(a3.shape[:-2] + (3 * Hp,))

    wih_p = pad_gates_last(jnp.transpose(w_ih).reshape(I, 3, H))            # (I, 3Hp)
    whh_p = pad_gates_last(jnp.transpose(w_hh).reshape(H, 3, H))            # (H, 3Hp)
    whh_p = jnp.pad(whh_p, ((0, Hp - H), (0, 0))).astype(compute_dtype)     # (Hp, 3Hp)

    # Fold b_hr / b_hz into the hoisted projection bias; keep b_hn separate
    # because r scales (gh_n + b_hn).
    b_pre = b_ih + jnp.concatenate([b_hh[:2 * H], jnp.zeros((H,), b_hh.dtype)])
    b_pre = pad_gates_last(b_pre.reshape(3, H)).astype(jnp.float32)         # (3Hp,)
    bhn_p = jnp.pad(b_hh[2 * H:], (0, Hp - H)).astype(jnp.float32)[None]    # (1, Hp)

    h0_p = jnp.pad(h0.astype(jnp.float32), ((0, Bp - B), (0, Hp - H)))      # (Bp, Hp)

    # --- hoisted input projection for all T steps, fused with the b,t -> t,b
    #     reorder.  Always f32 operands (bf16 x bf16 = f32 dots are rejected by
    #     some executors); only the streamed result is cast to compute_dtype.
    gi_dtype = compute_dtype
    gi_all = jnp.einsum('bti,ig->tbg',
                        x_bti.astype(jnp.float32), wih_p.astype(jnp.float32),
                        preferred_element_type=jnp.float32) + b_pre         # (T, B, 3Hp)

    # --- generation-aware VMEM budget -> time-block size Tb -------------------
    try:
        phys_vmem = int(pltpu.get_tpu_info().vmem_capacity_bytes)
    except Exception:
        phys_vmem = 64 * 2 ** 20                # conservative default (v7x per-core)
    vmem_cap = int(min(0.75 * phys_vmem, 100 * 2 ** 20))

    csz = jnp.dtype(compute_dtype).itemsize
    gsz = jnp.dtype(gi_dtype).itemsize
    osz = jnp.dtype(out_dtype).itemsize

    weight_bytes = Hp * 3 * Hp * csz
    single_buffer_weight = weight_bytes > (4 << 20)   # loop-invariant block: single-buffer when big
    const_bytes = ((1 if single_buffer_weight else 2) * weight_bytes
                   + 2 * B_blk * Hp * 4          # h0
                   + 2 * Hp * 4                  # b_hn
                   + 2 * B_blk * Hp * 4          # hN output
                   + B_blk * Hp * 4)             # carry scratch
    per_step = 2 * B_blk * (3 * Hp * gsz + Hp * osz)   # double-buffered gi + out per time step
    Tb = int(max(1, min(T, max_time_block, (vmem_cap - const_bytes) // per_step)))

    T_pad = _round_up(T, Tb)
    gi_all = jnp.pad(gi_all, ((0, T_pad - T), (0, Bp - B), (0, 0))).astype(gi_dtype)

    vmem_limit = int(min(vmem_cap,
                         max(32 * 2 ** 20, int(1.25 * (Tb * per_step + const_bytes)))))

    whh_kwargs = dict(pipeline_mode=pl.Buffered(1)) if single_buffer_weight else {}
    whh_spec = pl.BlockSpec((Hp, 3 * Hp), lambda b, t: (0, 0), **whh_kwargs)

    kernel = functools.partial(_gru_recurrent_kernel, t_real=T, unroll=min(Tb, 8))

    out_tbh, h_last_f32 = pl.pallas_call(
        kernel,
        out_shape=(jax.ShapeDtypeStruct((T_pad, Bp, Hp), out_dtype),
                   jax.ShapeDtypeStruct((Bp, Hp), jnp.float32)),
        grid_spec=pltpu.PrefetchScalarGridSpec(
            num_scalar_prefetch=0,
            grid=(nb, T_pad // Tb),              # (batch blocks, time blocks)
            in_specs=[
                pl.BlockSpec((Tb, B_blk, 3 * Hp), lambda b, t: (t, b, 0)),  # gi_all
                whh_spec,                                                   # W_hh^T
                pl.BlockSpec((1, Hp), lambda b, t: (0, 0)),                 # b_hn
                pl.BlockSpec((B_blk, Hp), lambda b, t: (b, 0)),             # h0
            ],
            out_specs=[
                pl.BlockSpec((Tb, B_blk, Hp), lambda b, t: (t, b, 0)),      # h_t slab
                pl.BlockSpec((B_blk, Hp), lambda b, t: (b, 0)),             # final h (f32)
            ],
            scratch_shapes=[pltpu.VMEM((B_blk, Hp), jnp.float32)],
        ),
        compiler_params=pltpu.CompilerParams(
            dimension_semantics=("parallel", "arbitrary"),   # batch parallel, time sequential
            vmem_limit_bytes=vmem_limit),
    )(gi_all, whh_p, bhn_p, h0_p)

    # Slice padding + convert to batch_first (PyTorch convention).
    # TODO(synk): if HLO shows a materialized transpose here, switch the kernel
    # to batch-first gi/out blocks instead (review item 8).
    outputs = jnp.transpose(out_tbh[:T, :B, :H], (1, 0, 2))                 # (B, T, H)
    last_hidden = h_last_f32[:B, :H][None]                                  # (1, B, H) f32
    return outputs, last_hidden


# ------------------------- RNNEncoder forward glue -------------------------- #

def rnn_encoder_forward(params, inputs, hidden=None, *, compute_dtype=jnp.float32):
    """Mirrors RNNEncoder.forward for name='gru', num_layers=1,
    bidirectional=False, embedder=None, lengths=None (plain-tensor input)."""
    B = inputs.shape[0]
    H = params["w_hh"].shape[1]
    if hidden is None:
        h0 = jnp.zeros((B, H), jnp.float32)
    else:
        h0 = hidden[0]
    # TODO(synk): packed/variable-length sequences (pack_padded_sequence path),
    # bidirectional hidden bridge, multi-layer + dropout, and the LSTM variant
    # are not implemented (lengths=None, bidirectional=False, num_layers=1 GRU only).
    return gru_pallas(inputs, params["w_ih"], params["w_hh"],
                      params["b_ih"], params["b_hh"], h0,
                      compute_dtype=compute_dtype)


# ------------------------------ pure-JAX ref -------------------------------- #

def gru_reference(x_bti, w_ih, w_hh, b_ih, b_hh, h0):
    H = w_hh.shape[1]

    def step(h, x_t):
        gi = x_t @ w_ih.T + b_ih
        gh = h @ w_hh.T + b_hh
        r = jax.nn.sigmoid(gi[:, :H] + gh[:, :H])
        z = jax.nn.sigmoid(gi[:, H:2 * H] + gh[:, H:2 * H])
        n = jnp.tanh(gi[:, 2 * H:] + r * gh[:, 2 * H:])
        h_new = (1.0 - z) * n + z * h
        return h_new, h_new

    h_last, ys = jax.lax.scan(step, h0, jnp.transpose(x_bti, (1, 0, 2)))
    return jnp.transpose(ys, (1, 0, 2)), h_last[None]


# ---------------------------------- main ------------------------------------ #

if __name__ == "__main__":
    B, T, I, H = 2, 8, 16, 32   # batch, seq, input_size, hidden_size
    key = jax.random.PRNGKey(0)
    kx, k1, k2, k3, k4 = jax.random.split(key, 5)

    x = jax.random.normal(kx, (B, T, I), jnp.float32)
    scale = 1.0 / jnp.sqrt(H)
    params = {
        "w_ih": jax.random.uniform(k1, (3 * H, I), jnp.float32, -scale, scale),
        "w_hh": jax.random.uniform(k2, (3 * H, H), jnp.float32, -scale, scale),
        "b_ih": jax.random.uniform(k3, (3 * H,), jnp.float32, -scale, scale),
        "b_hh": jax.random.uniform(k4, (3 * H,), jnp.float32, -scale, scale),
    }

    ref_out, ref_hn = gru_reference(
        x, params["w_ih"], params["w_hh"], params["b_ih"], params["b_hh"],
        jnp.zeros((B, H), jnp.float32))

    # f32 path (tight tolerance)
    outputs, last_hidden = rnn_encoder_forward(params, x)
    outputs = jax.block_until_ready(outputs)
    last_hidden = jax.block_until_ready(last_hidden)
    assert outputs.shape == (B, T, H) and last_hidden.shape == (1, B, H)
    assert jnp.allclose(outputs, ref_out, atol=1e-4, rtol=1e-4)
    assert jnp.allclose(last_hidden, ref_hn, atol=1e-4, rtol=1e-4)

    # bf16-weight path: bf16 MXU operands inside the kernel, f32 accumulation /
    # gate math / carry.  Only exercised on a real TPU backend (non-Mosaic
    # executors may reject bf16 x bf16 = f32 dots).
    if jax.devices()[0].platform == "tpu":
        outputs_bf, last_hidden_bf = rnn_encoder_forward(
            params, x, compute_dtype=jnp.bfloat16)
        outputs_bf = jax.block_until_ready(outputs_bf)
        last_hidden_bf = jax.block_until_ready(last_hidden_bf)
        assert jnp.allclose(outputs_bf, ref_out, atol=5e-2, rtol=5e-2)
        assert jnp.allclose(last_hidden_bf, ref_hn, atol=5e-2, rtol=5e-2)

    print("KERNEL_OK")
</pallas_src>

<mosaic_0001>
module attributes {stable_mosaic.version = 11 : i64} {
  func.func @_gru_recurrent_kernel(%arg0: i32, %arg1: i32, %arg2: memref<8x8x384xf32, #tpu.memory_space<vmem>>, %arg3: memref<128x384xf32, #tpu.memory_space<vmem>>, %arg4: memref<1x128xf32, #tpu.memory_space<vmem>>, %arg5: memref<8x128xf32, #tpu.memory_space<vmem>>, %arg6: memref<8x8x128xf32, #tpu.memory_space<vmem>>, %arg7: memref<8x128xf32, #tpu.memory_space<vmem>>, %arg8: memref<8x128xf32, #tpu.memory_space<vmem>>) attributes {dimension_semantics = [#tpu.dimension_semantics<parallel>, #tpu.dimension_semantics<arbitrary>], iteration_bounds = array<i64: 1, 1>, scalar_prefetch = 0 : i64, scratch_operands = 1 : i64, tpu.core_type = #tpu.core_type<tc>, window_params = [{transform_indices = @transform_0, window_bounds = array<i64: 8, 8, 384>}, {pipeline_mode = #tpu.pipeline_mode<synchronous>, transform_indices = @transform_1, window_bounds = array<i64: 128, 384>}, {pipeline_mode = #tpu.pipeline_mode<synchronous>, transform_indices = @transform_2, window_bounds = array<i64: 1, 128>}, {transform_indices = @transform_3, window_bounds = array<i64: 8, 128>}, {transform_indices = @transform_4, window_bounds = array<i64: 8, 8, 128>}, {transform_indices = @transform_5, window_bounds = array<i64: 8, 128>}]} {
    %c0_i32 = arith.constant 0 : i32
    %0 = arith.cmpi eq, %arg1, %c0_i32 : i32
    %1 = arith.extui %0 : i1 to i32
    %c0_i32_0 = arith.constant 0 : i32
    %2 = arith.cmpi ne, %1, %c0_i32_0 : i32
    scf.if %2 {
      %c0_83 = arith.constant 0 : index
      %c0_84 = arith.constant 0 : index
      %301 = vector.load %arg5[%c0_83, %c0_84] : memref<8x128xf32, #tpu.memory_space<vmem>>, vector<8x128xf32>
      %c0_85 = arith.constant 0 : index
      %c0_86 = arith.constant 0 : index
      %302 = vector.load %arg8[%c0_85, %c0_86] : memref<8x128xf32, #tpu.memory_space<vmem>>, vector<8x128xf32>
      tpu.vector_store %arg8[%c0_85, %c0_86], %301 {strides = array<i32>} : memref<8x128xf32, #tpu.memory_space<vmem>>, vector<8x128xf32>,
    } else {
    }
    %c0 = arith.constant 0 : index
    %c0_1 = arith.constant 0 : index
    %3 = vector.load %arg3[%c0, %c0_1] : memref<128x384xf32, #tpu.memory_space<vmem>>, vector<128x384xf32>
    %4 = vector.extract_strided_slice %3 {offsets = [0, 0], sizes = [128, 256], strides = [1, 1]} : vector<128x384xf32> to vector<128x256xf32>
    %5 = vector.extract_strided_slice %3 {offsets = [0, 256], sizes = [128, 128], strides = [1, 1]} : vector<128x384xf32> to vector<128x128xf32>
    %c0_2 = arith.constant 0 : index
    %c0_3 = arith.constant 0 : index
    %6 = vector.load %arg4[%c0_2, %c0_3] : memref<1x128xf32, #tpu.memory_space<vmem>>, vector<1x128xf32>
    %7 = vector.shape_cast %6 : vector<1x128xf32> to vector<1x128xf32>
    %8 = vector.broadcast %7 : vector<1x128xf32> to vector<8x128xf32>
    %c8_i32 = arith.constant 8 : i32
    %9 = arith.muli %arg1, %c8_i32 : i32
    %c0_4 = arith.constant 0 : index
    %c0_5 = arith.constant 0 : index
    %10 = vector.load %arg8[%c0_4, %c0_5] : memref<8x128xf32, #tpu.memory_space<vmem>>, vector<8x128xf32>
    %c0_i32_6 = arith.constant 0 : i32
    %11 = arith.index_cast %c0_i32_6 : i32 to index
    %c0_7 = arith.constant 0 : index
    %c0_8 = arith.constant 0 : index
    %12 = vector.load %arg2[%11, %c0_7, %c0_8] : memref<8x8x384xf32, #tpu.memory_space<vmem>>, vector<1x8x384xf32>
    %13 = vector.shape_cast %12 : vector<1x8x384xf32> to vector<8x384xf32>
    %cst = arith.constant dense<0.000000e+00> : vector<8x256xf32>
    %14 = tpu.matmul %10, %4, %cst {dimension_numbers = #tpu.dot_dimension_numbers<[1], [0], [0], [1], [0, 0, 1, 1], [], []>} : vector<8x128xf32>, vector<128x256xf32>, vector<8x256xf32> -> vector<8x256xf32>
    %cst_9 = arith.constant dense<0.000000e+00> : vector<8x128xf32>
    %15 = tpu.matmul %10, %5, %cst_9 {dimension_numbers = #tpu.dot_dimension_numbers<[1], [0], [0], [1], [0, 0, 1, 1], [], []>} : vector<8x128xf32>, vector<128x128xf32>, vector<8x128xf32> -> vector<8x128xf32>
    %16 = vector.extract_strided_slice %13 {offsets = [0, 0], sizes = [8, 128], strides = [1, 1]} : vector<8x384xf32> to vector<8x128xf32>
    %17 = vector.extract_strided_slice %14 {offsets = [0, 0], sizes = [8, 128], strides = [1, 1]} : vector<8x256xf32> to vector<8x128xf32>
    %18 = arith.addf %16, %17 : vector<8x128xf32>
    %19 = arith.negf %18 : vector<8x128xf32>
    %20 = math.exp %19 : vector<8x128xf32>
    %cst_10 = arith.constant 1.000000e+00 : f32
    %21 = vector.broadcast %cst_10 : f32 to vector<8x128xf32>
    %22 = arith.addf %21, %20 : vector<8x128xf32>
    %23 = arith.divf %21, %22 : vector<8x128xf32>
    %24 = vector.extract_strided_slice %13 {offsets = [0, 128], sizes = [8, 128], strides = [1, 1]} : vector<8x384xf32> to vector<8x128xf32>
    %25 = vector.extract_strided_slice %14 {offsets = [0, 128], sizes = [8, 128], strides = [1, 1]} : vector<8x256xf32> to vector<8x128xf32>
    %26 = arith.addf %24, %25 : vector<8x128xf32>
    %27 = arith.negf %26 : vector<8x128xf32>
    %28 = math.exp %27 : vector<8x128xf32>
    %cst_11 = arith.constant 1.000000e+00 : f32
    %29 = vector.broadcast %cst_11 : f32 to vector<8x128xf32>
    %30 = arith.addf %29, %28 : vector<8x128xf32>
    %31 = arith.divf %29, %30 : vector<8x128xf32>
    %32 = vector.extract_strided_slice %13 {offsets = [0, 256], sizes = [8, 128], strides = [1, 1]} : vector<8x384xf32> to vector<8x128xf32>
    %33 = arith.addf %15, %8 : vector<8x128xf32>
    %34 = arith.mulf %23, %33 : vector<8x128xf32>
    %35 = arith.addf %32, %34 : vector<8x128xf32>
    %36 = math.tanh %35 : vector<8x128xf32>
    %37 = arith.subf %10, %36 : vector<8x128xf32>
    %38 = arith.mulf %31, %37 : vector<8x128xf32>
    %39 = arith.addf %36, %38 : vector<8x128xf32>
    %40 = arith.index_cast %c0_i32_6 : i32 to index
    %c0_12 = arith.constant 0 : index
    %c0_13 = arith.constant 0 : index
    %41 = vector.load %arg6[%40, %c0_12, %c0_13] : memref<8x8x128xf32, #tpu.memory_space<vmem>>, vector<1x8x128xf32>
    %42 = vector.shape_cast %41 : vector<1x8x128xf32> to vector<8x128xf32>
    %43 = vector.shape_cast %39 : vector<8x128xf32> to vector<1x8x128xf32>
    tpu.vector_store %arg6[%40, %c0_12, %c0_13], %43 {strides = array<i32>} : memref<8x8x128xf32, #tpu.memory_space<vmem>>, vector<1x8x128xf32>,
    %44 = arith.addi %9, %c0_i32_6 : i32
    %c8_i32_14 = arith.constant 8 : i32
    %45 = arith.cmpi slt, %44, %c8_i32_14 : i32
    %46 = arith.select %45, %39, %10 : vector<8x128xf32>
    %c1_i32 = arith.constant 1 : i32
    %47 = arith.index_cast %c1_i32 : i32 to index
    %c0_15 = arith.constant 0 : index
    %c0_16 = arith.constant 0 : index
    %48 = vector.load %arg2[%47, %c0_15, %c0_16] : memref<8x8x384xf32, #tpu.memory_space<vmem>>, vector<1x8x384xf32>
    %49 = vector.shape_cast %48 : vector<1x8x384xf32> to vector<8x384xf32>
    %cst_17 = arith.constant dense<0.000000e+00> : vector<8x256xf32>
    %50 = tpu.matmul %46, %4, %cst_17 {dimension_numbers = #tpu.dot_dimension_numbers<[1], [0], [0], [1], [0, 0, 1, 1], [], []>} : vector<8x128xf32>, vector<128x256xf32>, vector<8x256xf32> -> vector<8x256xf32>
    %cst_18 = arith.constant dense<0.000000e+00> : vector<8x128xf32>
    %51 = tpu.matmul %46, %5, %cst_18 {dimension_numbers = #tpu.dot_dimension_numbers<[1], [0], [0], [1], [0, 0, 1, 1], [], []>} : vector<8x128xf32>, vector<128x128xf32>, vector<8x128xf32> -> vector<8x128xf32>
    %52 = vector.extract_strided_slice %49 {offsets = [0, 0], sizes = [8, 128], strides = [1, 1]} : vector<8x384xf32> to vector<8x128xf32>
    %53 = vector.extract_strided_slice %50 {offsets = [0, 0], sizes = [8, 128], strides = [1, 1]} : vector<8x256xf32> to vector<8x128xf32>
    %54 = arith.addf %52, %53 : vector<8x128xf32>
    %55 = arith.negf %54 : vector<8x128xf32>
    %56 = math.exp %55 : vector<8x128xf32>
    %cst_19 = arith.constant 1.000000e+00 : f32
    %57 = vector.broadcast %cst_19 : f32 to vector<8x128xf32>
    %58 = arith.addf %57, %56 : vector<8x128xf32>
    %59 = arith.divf %57, %58 : vector<8x128xf32>
    %60 = vector.extract_strided_slice %49 {offsets = [0, 128], sizes = [8, 128], strides = [1, 1]} : vector<8x384xf32> to vector<8x128xf32>
    %61 = vector.extract_strided_slice %50 {offsets = [0, 128], sizes = [8, 128], strides = [1, 1]} : vector<8x256xf32> to vector<8x128xf32>
    %62 = arith.addf %60, %61 : vector<8x128xf32>
    %63 = arith.negf %62 : vector<8x128xf32>
    %64 = math.exp %63 : vector<8x128xf32>
    %cst_20 = arith.constant 1.000000e+00 : f32
    %65 = vector.broadcast %cst_20 : f32 to vector<8x128xf32>
    %66 = arith.addf %65, %64 : vector<8x128xf32>
    %67 = arith.divf %65, %66 : vector<8x128xf32>
    %68 = vector.extract_strided_slice %49 {offsets = [0, 256], sizes = [8, 128], strides = [1, 1]} : vector<8x384xf32> to vector<8x128xf32>
    %69 = arith.addf %51, %8 : vector<8x128xf32>
    %70 = arith.mulf %59, %69 : vector<8x128xf32>
    %71 = arith.addf %68, %70 : vector<8x128xf32>
    %72 = math.tanh %71 : vector<8x128xf32>
    %73 = arith.subf %46, %72 : vector<8x128xf32>
    %74 = arith.mulf %67, %73 : vector<8x128xf32>
    %75 = arith.addf %72, %74 : vector<8x128xf32>
    %76 = arith.index_cast %c1_i32 : i32 to index
    %c0_21 = arith.constant 0 : index
    %c0_22 = arith.constant 0 : index
    %77 = vector.load %arg6[%76, %c0_21, %c0_22] : memref<8x8x128xf32, #tpu.memory_space<vmem>>, vector<1x8x128xf32>
    %78 = vector.shape_cast %77 : vector<1x8x128xf32> to vector<8x128xf32>
    %79 = vector.shape_cast %75 : vector<8x128xf32> to vector<1x8x128xf32>
    tpu.vector_store %arg6[%76, %c0_21, %c0_22], %79 {strides = array<i32>} : memref<8x8x128xf32, #tpu.memory_space<vmem>>, vector<1x8x128xf32>,
    %80 = arith.addi %9, %c1_i32 : i32
    %c8_i32_23 = arith.constant 8 : i32
    %81 = arith.cmpi slt, %80, %c8_i32_23 : i32
    %82 = arith.select %81, %75, %46 : vector<8x128xf32>
    %c2_i32 = arith.constant 2 : i32
    %83 = arith.index_cast %c2_i32 : i32 to index
    %c0_24 = arith.constant 0 : index
    %c0_25 = arith.constant 0 : index
    %84 = vector.load %arg2[%83, %c0_24, %c0_25] : memref<8x8x384xf32, #tpu.memory_space<vmem>>, vector<1x8x384xf32>
    %85 = vector.shape_cast %84 : vector<1x8x384xf32> to vector<8x384xf32>
    %cst_26 = arith.constant dense<0.000000e+00> : vector<8x256xf32>
    %86 = tpu.matmul %82, %4, %cst_26 {dimension_numbers = #tpu.dot_dimension_numbers<[1], [0], [0], [1], [0, 0, 1, 1], [], []>} : vector<8x128xf32>, vector<128x256xf32>, vector<8x256xf32> -> vector<8x256xf32>
    %cst_27 = arith.constant dense<0.000000e+00> : vector<8x128xf32>
    %87 = tpu.matmul %82, %5, %cst_27 {dimension_numbers = #tpu.dot_dimension_numbers<[1], [0], [0], [1], [0, 0, 1, 1], [], []>} : vector<8x128xf32>, vector<128x128xf32>, vector<8x128xf32> -> vector<8x128xf32>
    %88 = vector.extract_strided_slice %85 {offsets = [0, 0], sizes = [8, 128], strides = [1, 1]} : vector<8x384xf32> to vector<8x128xf32>
    %89 = vector.extract_strided_slice %86 {offsets = [0, 0], sizes = [8, 128], strides = [1, 1]} : vector<8x256xf32> to vector<8x128xf32>
    %90 = arith.addf %88, %89 : vector<8x128xf32>
    %91 = arith.negf %90 : vector<8x128xf32>
    %92 = math.exp %91 : vector<8x128xf32>
    %cst_28 = arith.constant 1.000000e+00 : f32
    %93 = vector.broadcast %cst_28 : f32 to vector<8x128xf32>
    %94 = arith.addf %93, %92 : vector<8x128xf32>
    %95 = arith.divf %93, %94 : vector<8x128xf32>
    %96 = vector.extract_strided_slice %85 {offsets = [0, 128], sizes = [8, 128], strides = [1, 1]} : vector<8x384xf32> to vector<8x128xf32>
    %97 = vector.extract_strided_slice %86 {offsets = [0, 128], sizes = [8, 128], strides = [1, 1]} : vector<8x256xf32> to vector<8x128xf32>
    %98 = arith.addf %96, %97 : vector<8x128xf32>
    %99 = arith.negf %98 : vector<8x128xf32>
    %100 = math.exp %99 : vector<8x128xf32>
    %cst_29 = arith.constant 1.000000e+00 : f32
    %101 = vector.broadcast %cst_29 : f32 to vector<8x128xf32>
    %102 = arith.addf %101, %100 : vector<8x128xf32>
    %103 = arith.divf %101, %102 : vector<8x128xf32>
    %104 = vector.extract_strided_slice %85 {offsets = [0, 256], sizes = [8, 128], strides = [1, 1]} : vector<8x384xf32> to vector<8x128xf32>
    %105 = arith.addf %87, %8 : vector<8x128xf32>
    %106 = arith.mulf %95, %105 : vector<8x128xf32>
    %107 = arith.addf %104, %106 : vector<8x128xf32>
    %108 = math.tanh %107 : vector<8x128xf32>
    %109 = arith.subf %82, %108 : vector<8x128xf32>
    %110 = arith.mulf %103, %109 : vector<8x128xf32>
    %111 = arith.addf %108, %110 : vector<8x128xf32>
    %112 = arith.index_cast %c2_i32 : i32 to index
    %c0_30 = arith.constant 0 : index
    %c0_31 = arith.constant 0 : index
    %113 = vector.load %arg6[%112, %c0_30, %c0_31] : memref<8x8x128xf32, #tpu.memory_space<vmem>>, vector<1x8x128xf32>
    %114 = vector.shape_cast %113 : vector<1x8x128xf32> to vector<8x128xf32>
    %115 = vector.shape_cast %111 : vector<8x128xf32> to vector<1x8x128xf32>
    tpu.vector_store %arg6[%112, %c0_30, %c0_31], %115 {strides = array<i32>} : memref<8x8x128xf32, #tpu.memory_space<vmem>>, vector<1x8x128xf32>,
    %116 = arith.addi %9, %c2_i32 : i32
    %c8_i32_32 = arith.constant 8 : i32
    %117 = arith.cmpi slt, %116, %c8_i32_32 : i32
    %118 = arith.select %117, %111, %82 : vector<8x128xf32>
    %c3_i32 = arith.constant 3 : i32
    %119 = arith.index_cast %c3_i32 : i32 to index
    %c0_33 = arith.constant 0 : index
    %c0_34 = arith.constant 0 : index
    %120 = vector.load %arg2[%119, %c0_33, %c0_34] : memref<8x8x384xf32, #tpu.memory_space<vmem>>, vector<1x8x384xf32>
    %121 = vector.shape_cast %120 : vector<1x8x384xf32> to vector<8x384xf32>
    %cst_35 = arith.constant dense<0.000000e+00> : vector<8x256xf32>
    %122 = tpu.matmul %118, %4, %cst_35 {dimension_numbers = #tpu.dot_dimension_numbers<[1], [0], [0], [1], [0, 0, 1, 1], [], []>} : vector<8x128xf32>, vector<128x256xf32>, vector<8x256xf32> -> vector<8x256xf32>
    %cst_36 = arith.constant dense<0.000000e+00> : vector<8x128xf32>
    %123 = tpu.matmul %118, %5, %cst_36 {dimension_numbers = #tpu.dot_dimension_numbers<[1], [0], [0], [1], [0, 0, 1, 1], [], []>} : vector<8x128xf32>, vector<128x128xf32>, vector<8x128xf32> -> vector<8x128xf32>
    %124 = vector.extract_strided_slice %121 {offsets = [0, 0], sizes = [8, 128], strides = [1, 1]} : vector<8x384xf32> to vector<8x128xf32>
    %125 = vector.extract_strided_slice %122 {offsets = [0, 0], sizes = [8, 128], strides = [1, 1]} : vector<8x256xf32> to vector<8x128xf32>
    %126 = arith.addf %124, %125 : vector<8x128xf32>
    %127 = arith.negf %126 : vector<8x128xf32>
    %128 = math.exp %127 : vector<8x128xf32>
    %cst_37 = arith.constant 1.000000e+00 : f32
    %129 = vector.broadcast %cst_37 : f32 to vector<8x128xf32>
    %130 = arith.addf %129, %128 : vector<8x128xf32>
    %131 = arith.divf %129, %130 : vector<8x128xf32>
    %132 = vector.extract_strided_slice %121 {offsets = [0, 128], sizes = [8, 128], strides = [1, 1]} : vector<8x384xf32> to vector<8x128xf32>
    %133 = vector.extract_strided_slice %122 {offsets = [0, 128], sizes = [8, 128], strides = [1, 1]} : vector<8x256xf32> to vector<8x128xf32>
    %134 = arith.addf %132, %133 : vector<8x128xf32>
    %135 = arith.negf %134 : vector<8x128xf32>
    %136 = math.exp %135 : vector<8x128xf32>
    %cst_38 = arith.constant 1.000000e+00 : f32
    %137 = vector.broadcast %cst_38 : f32 to vector<8x128xf32>
    %138 = arith.addf %137, %136 : vector<8x128xf32>
    %139 = arith.divf %137, %138 : vector<8x128xf32>
    %140 = vector.extract_strided_slice %121 {offsets = [0, 256], sizes = [8, 128], strides = [1, 1]} : vector<8x384xf32> to vector<8x128xf32>
    %141 = arith.addf %123, %8 : vector<8x128xf32>
    %142 = arith.mulf %131, %141 : vector<8x128xf32>
    %143 = arith.addf %140, %142 : vector<8x128xf32>
    %144 = math.tanh %143 : vector<8x128xf32>
    %145 = arith.subf %118, %144 : vector<8x128xf32>
    %146 = arith.mulf %139, %145 : vector<8x128xf32>
    %147 = arith.addf %144, %146 : vector<8x128xf32>
    %148 = arith.index_cast %c3_i32 : i32 to index
    %c0_39 = arith.constant 0 : index
    %c0_40 = arith.constant 0 : index
    %149 = vector.load %arg6[%148, %c0_39, %c0_40] : memref<8x8x128xf32, #tpu.memory_space<vmem>>, vector<1x8x128xf32>
    %150 = vector.shape_cast %149 : vector<1x8x128xf32> to vector<8x128xf32>
    %151 = vector.shape_cast %147 : vector<8x128xf32> to vector<1x8x128xf32>
    tpu.vector_store %arg6[%148, %c0_39, %c0_40], %151 {strides = array<i32>} : memref<8x8x128xf32, #tpu.memory_space<vmem>>, vector<1x8x128xf32>,
    %152 = arith.addi %9, %c3_i32 : i32
    %c8_i32_41 = arith.constant 8 : i32
    %153 = arith.cmpi slt, %152, %c8_i32_41 : i32
    %154 = arith.select %153, %147, %118 : vector<8x128xf32>
    %c4_i32 = arith.constant 4 : i32
    %155 = arith.index_cast %c4_i32 : i32 to index
    %c0_42 = arith.constant 0 : index
    %c0_43 = arith.constant 0 : index
    %156 = vector.load %arg2[%155, %c0_42, %c0_43] : memref<8x8x384xf32, #tpu.memory_space<vmem>>, vector<1x8x384xf32>
    %157 = vector.shape_cast %156 : vector<1x8x384xf32> to vector<8x384xf32>
    %cst_44 = arith.constant dense<0.000000e+00> : vector<8x256xf32>
    %158 = tpu.matmul %154, %4, %cst_44 {dimension_numbers = #tpu.dot_dimension_numbers<[1], [0], [0], [1], [0, 0, 1, 1], [], []>} : vector<8x128xf32>, vector<128x256xf32>, vector<8x256xf32> -> vector<8x256xf32>
    %cst_45 = arith.constant dense<0.000000e+00> : vector<8x128xf32>
    %159 = tpu.matmul %154, %5, %cst_45 {dimension_numbers = #tpu.dot_dimension_numbers<[1], [0], [0], [1], [0, 0, 1, 1], [], []>} : vector<8x128xf32>, vector<128x128xf32>, vector<8x128xf32> -> vector<8x128xf32>
    %160 = vector.extract_strided_slice %157 {offsets = [0, 0], sizes = [8, 128], strides = [1, 1]} : vector<8x384xf32> to vector<8x128xf32>
    %161 = vector.extract_strided_slice %158 {offsets = [0, 0], sizes = [8, 128], strides = [1, 1]} : vector<8x256xf32> to vector<8x128xf32>
    %162 = arith.addf %160, %161 : vector<8x128xf32>
    %163 = arith.negf %162 : vector<8x128xf32>
    %164 = math.exp %163 : vector<8x128xf32>
    %cst_46 = arith.constant 1.000000e+00 : f32
    %165 = vector.broadcast %cst_46 : f32 to vector<8x128xf32>
    %166 = arith.addf %165, %164 : vector<8x128xf32>
    %167 = arith.divf %165, %166 : vector<8x128xf32>
    %168 = vector.extract_strided_slice %157 {offsets = [0, 128], sizes = [8, 128], strides = [1, 1]} : vector<8x384xf32> to vector<8x128xf32>
    %169 = vector.extract_strided_slice %158 {offsets = [0, 128], sizes = [8, 128], strides = [1, 1]} : vector<8x256xf32> to vector<8x128xf32>
    %170 = arith.addf %168, %169 : vector<8x128xf32>
    %171 = arith.negf %170 : vector<8x128xf32>
    %172 = math.exp %171 : vector<8x128xf32>
    %cst_47 = arith.constant 1.000000e+00 : f32
    %173 = vector.broadcast %cst_47 : f32 to vector<8x128xf32>
    %174 = arith.addf %173, %172 : vector<8x128xf32>
    %175 = arith.divf %173, %174 : vector<8x128xf32>
    %176 = vector.extract_strided_slice %157 {offsets = [0, 256], sizes = [8, 128], strides = [1, 1]} : vector<8x384xf32> to vector<8x128xf32>
    %177 = arith.addf %159, %8 : vector<8x128xf32>
    %178 = arith.mulf %167, %177 : vector<8x128xf32>
    %179 = arith.addf %176, %178 : vector<8x128xf32>
    %180 = math.tanh %179 : vector<8x128xf32>
    %181 = arith.subf %154, %180 : vector<8x128xf32>
    %182 = arith.mulf %175, %181 : vector<8x128xf32>
    %183 = arith.addf %180, %182 : vector<8x128xf32>
    %184 = arith.index_cast %c4_i32 : i32 to index
    %c0_48 = arith.constant 0 : index
    %c0_49 = arith.constant 0 : index
    %185 = vector.load %arg6[%184, %c0_48, %c0_49] : memref<8x8x128xf32, #tpu.memory_space<vmem>>, vector<1x8x128xf32>
    %186 = vector.shape_cast %185 : vector<1x8x128xf32> to vector<8x128xf32>
    %187 = vector.shape_cast %183 : vector<8x128xf32> to vector<1x8x128xf32>
    tpu.vector_store %arg6[%184, %c0_48, %c0_49], %187 {strides = array<i32>} : memref<8x8x128xf32, #tpu.memory_space<vmem>>, vector<1x8x128xf32>,
    %188 = arith.addi %9, %c4_i32 : i32
    %c8_i32_50 = arith.constant 8 : i32
    %189 = arith.cmpi slt, %188, %c8_i32_50 : i32
    %190 = arith.select %189, %183, %154 : vector<8x128xf32>
    %c5_i32 = arith.constant 5 : i32
    %191 = arith.index_cast %c5_i32 : i32 to index
    %c0_51 = arith.constant 0 : index
    %c0_52 = arith.constant 0 : index
    %192 = vector.load %arg2[%191, %c0_51, %c0_52] : memref<8x8x384xf32, #tpu.memory_space<vmem>>, vector<1x8x384xf32>
    %193 = vector.shape_cast %192 : vector<1x8x384xf32> to vector<8x384xf32>
    %cst_53 = arith.constant dense<0.000000e+00> : vector<8x256xf32>
    %194 = tpu.matmul %190, %4, %cst_53 {dimension_numbers = #tpu.dot_dimension_numbers<[1], [0], [0], [1], [0, 0, 1, 1], [], []>} : vector<8x128xf32>, vector<128x256xf32>, vector<8x256xf32> -> vector<8x256xf32>
    %cst_54 = arith.constant dense<0.000000e+00> : vector<8x128xf32>
    %195 = tpu.matmul %190, %5, %cst_54 {dimension_numbers = #tpu.dot_dimension_numbers<[1], [0], [0], [1], [0, 0, 1, 1], [], []>} : vector<8x128xf32>, vector<128x128xf32>, vector<8x128xf32> -> vector<8x128xf32>
    %196 = vector.extract_strided_slice %193 {offsets = [0, 0], sizes = [8, 128], strides = [1, 1]} : vector<8x384xf32> to vector<8x128xf32>
    %197 = vector.extract_strided_slice %194 {offsets = [0, 0], sizes = [8, 128], strides = [1, 1]} : vector<8x256xf32> to vector<8x128xf32>
    %198 = arith.addf %196, %197 : vector<8x128xf32>
    %199 = arith.negf %198 : vector<8x128xf32>
    %200 = math.exp %199 : vector<8x128xf32>
    %cst_55 = arith.constant 1.000000e+00 : f32
    %201 = vector.broadcast %cst_55 : f32 to vector<8x128xf32>
    %202 = arith.addf %201, %200 : vector<8x128xf32>
    %203 = arith.divf %201, %202 : vector<8x128xf32>
    %204 = vector.extract_strided_slice %193 {offsets = [0, 128], sizes = [8, 128], strides = [1, 1]} : vector<8x384xf32> to vector<8x128xf32>
    %205 = vector.extract_strided_slice %194 {offsets = [0, 128], sizes = [8, 128], strides = [1, 1]} : vector<8x256xf32> to vector<8x128xf32>
    %206 = arith.addf %204, %205 : vector<8x128xf32>
    %207 = arith.negf %206 : vector<8x128xf32>
    %208 = math.exp %207 : vector<8x128xf32>
    %cst_56 = arith.constant 1.000000e+00 : f32
    %209 = vector.broadcast %cst_56 : f32 to vector<8x128xf32>
    %210 = arith.addf %209, %208 : vector<8x128xf32>
    %211 = arith.divf %209, %210 : vector<8x128xf32>
    %212 = vector.extract_strided_slice %193 {offsets = [0, 256], sizes = [8, 128], strides = [1, 1]} : vector<8x384xf32> to vector<8x128xf32>
    %213 = arith.addf %195, %8 : vector<8x128xf32>
    %214 = arith.mulf %203, %213 : vector<8x128xf32>
    %215 = arith.addf %212, %214 : vector<8x128xf32>
    %216 = math.tanh %215 : vector<8x128xf32>
    %217 = arith.subf %190, %216 : vector<8x128xf32>
    %218 = arith.mulf %211, %217 : vector<8x128xf32>
    %219 = arith.addf %216, %218 : vector<8x128xf32>
    %220 = arith.index_cast %c5_i32 : i32 to index
    %c0_57 = arith.constant 0 : index
    %c0_58 = arith.constant 0 : index
    %221 = vector.load %arg6[%220, %c0_57, %c0_58] : memref<8x8x128xf32, #tpu.memory_space<vmem>>, vector<1x8x128xf32>
    %222 = vector.shape_cast %221 : vector<1x8x128xf32> to vector<8x128xf32>
    %223 = vector.shape_cast %219 : vector<8x128xf32> to vector<1x8x128xf32>
    tpu.vector_store %arg6[%220, %c0_57, %c0_58], %223 {strides = array<i32>} : memref<8x8x128xf32, #tpu.memory_space<vmem>>, vector<1x8x128xf32>,
    %224 = arith.addi %9, %c5_i32 : i32
    %c8_i32_59 = arith.constant 8 : i32
    %225 = arith.cmpi slt, %224, %c8_i32_59 : i32
    %226 = arith.select %225, %219, %190 : vector<8x128xf32>
    %c6_i32 = arith.constant 6 : i32
    %227 = arith.index_cast %c6_i32 : i32 to index
    %c0_60 = arith.constant 0 : index
    %c0_61 = arith.constant 0 : index
    %228 = vector.load %arg2[%227, %c0_60, %c0_61] : memref<8x8x384xf32, #tpu.memory_space<vmem>>, vector<1x8x384xf32>
    %229 = vector.shape_cast %228 : vector<1x8x384xf32> to vector<8x384xf32>
    %cst_62 = arith.constant dense<0.000000e+00> : vector<8x256xf32>
    %230 = tpu.matmul %226, %4, %cst_62 {dimension_numbers = #tpu.dot_dimension_numbers<[1], [0], [0], [1], [0, 0, 1, 1], [], []>} : vector<8x128xf32>, vector<128x256xf32>, vector<8x256xf32> -> vector<8x256xf32>
    %cst_63 = arith.constant dense<0.000000e+00> : vector<8x128xf32>
    %231 = tpu.matmul %226, %5, %cst_63 {dimension_numbers = #tpu.dot_dimension_numbers<[1], [0], [0], [1], [0, 0, 1, 1], [], []>} : vector<8x128xf32>, vector<128x128xf32>, vector<8x128xf32> -> vector<8x128xf32>
    %232 = vector.extract_strided_slice %229 {offsets = [0, 0], sizes = [8, 128], strides = [1, 1]} : vector<8x384xf32> to vector<8x128xf32>
    %233 = vector.extract_strided_slice %230 {offsets = [0, 0], sizes = [8, 128], strides = [1, 1]} : vector<8x256xf32> to vector<8x128xf32>
    %234 = arith.addf %232, %233 : vector<8x128xf32>
    %235 = arith.negf %234 : vector<8x128xf32>
    %236 = math.exp %235 : vector<8x128xf32>
    %cst_64 = arith.constant 1.000000e+00 : f32
    %237 = vector.broadcast %cst_64 : f32 to vector<8x128xf32>
    %238 = arith.addf %237, %236 : vector<8x128xf32>
    %239 = arith.divf %237, %238 : vector<8x128xf32>
    %240 = vector.extract_strided_slice %229 {offsets = [0, 128], sizes = [8, 128], strides = [1, 1]} : vector<8x384xf32> to vector<8x128xf32>
    %241 = vector.extract_strided_slice %230 {offsets = [0, 128], sizes = [8, 128], strides = [1, 1]} : vector<8x256xf32> to vector<8x128xf32>
    %242 = arith.addf %240, %241 : vector<8x128xf32>
    %243 = arith.negf %242 : vector<8x128xf32>
    %244 = math.exp %243 : vector<8x128xf32>
    %cst_65 = arith.constant 1.000000e+00 : f32
    %245 = vector.broadcast %cst_65 : f32 to vector<8x128xf32>
    %246 = arith.addf %245, %244 : vector<8x128xf32>
    %247 = arith.divf %245, %246 : vector<8x128xf32>
    %248 = vector.extract_strided_slice %229 {offsets = [0, 256], sizes = [8, 128], strides = [1, 1]} : vector<8x384xf32> to vector<8x128xf32>
    %249 = arith.addf %231, %8 : vector<8x128xf32>
    %250 = arith.mulf %239, %249 : vector<8x128xf32>
    %251 = arith.addf %248, %250 : vector<8x128xf32>
    %252 = math.tanh %251 : vector<8x128xf32>
    %253 = arith.subf %226, %252 : vector<8x128xf32>
    %254 = arith.mulf %247, %253 : vector<8x128xf32>
    %255 = arith.addf %252, %254 : vector<8x128xf32>
    %256 = arith.index_cast %c6_i32 : i32 to index
    %c0_66 = arith.constant 0 : index
    %c0_67 = arith.constant 0 : index
    %257 = vector.load %arg6[%256, %c0_66, %c0_67] : memref<8x8x128xf32, #tpu.memory_space<vmem>>, vector<1x8x128xf32>
    %258 = vector.shape_cast %257 : vector<1x8x128xf32> to vector<8x128xf32>
    %259 = vector.shape_cast %255 : vector<8x128xf32> to vector<1x8x128xf32>
    tpu.vector_store %arg6[%256, %c0_66, %c0_67], %259 {strides = array<i32>} : memref<8x8x128xf32, #tpu.memory_space<vmem>>, vector<1x8x128xf32>,
    %260 = arith.addi %9, %c6_i32 : i32
    %c8_i32_68 = arith.constant 8 : i32
    %261 = arith.cmpi slt, %260, %c8_i32_68 : i32
    %262 = arith.select %261, %255, %226 : vector<8x128xf32>
    %c7_i32 = arith.constant 7 : i32
    %263 = arith.index_cast %c7_i32 : i32 to index
    %c0_69 = arith.constant 0 : index
    %c0_70 = arith.constant 0 : index
    %264 = vector.load %arg2[%263, %c0_69, %c0_70] : memref<8x8x384xf32, #tpu.memory_space<vmem>>, vector<1x8x384xf32>
    %265 = vector.shape_cast %264 : vector<1x8x384xf32> to vector<8x384xf32>
    %cst_71 = arith.constant dense<0.000000e+00> : vector<8x256xf32>
    %266 = tpu.matmul %262, %4, %cst_71 {dimension_numbers = #tpu.dot_dimension_numbers<[1], [0], [0], [1], [0, 0, 1, 1], [], []>} : vector<8x128xf32>, vector<128x256xf32>, vector<8x256xf32> -> vector<8x256xf32>
    %cst_72 = arith.constant dense<0.000000e+00> : vector<8x128xf32>
    %267 = tpu.matmul %262, %5, %cst_72 {dimension_numbers = #tpu.dot_dimension_numbers<[1], [0], [0], [1], [0, 0, 1, 1], [], []>} : vector<8x128xf32>, vector<128x128xf32>, vector<8x128xf32> -> vector<8x128xf32>
    %268 = vector.extract_strided_slice %265 {offsets = [0, 0], sizes = [8, 128], strides = [1, 1]} : vector<8x384xf32> to vector<8x128xf32>
    %269 = vector.extract_strided_slice %266 {offsets = [0, 0], sizes = [8, 128], strides = [1, 1]} : vector<8x256xf32> to vector<8x128xf32>
    %270 = arith.addf %268, %269 : vector<8x128xf32>
    %271 = arith.negf %270 : vector<8x128xf32>
    %272 = math.exp %271 : vector<8x128xf32>
    %cst_73 = arith.constant 1.000000e+00 : f32
    %273 = vector.broadcast %cst_73 : f32 to vector<8x128xf32>
    %274 = arith.addf %273, %272 : vector<8x128xf32>
    %275 = arith.divf %273, %274 : vector<8x128xf32>
    %276 = vector.extract_strided_slice %265 {offsets = [0, 128], sizes = [8, 128], strides = [1, 1]} : vector<8x384xf32> to vector<8x128xf32>
    %277 = vector.extract_strided_slice %266 {offsets = [0, 128], sizes = [8, 128], strides = [1, 1]} : vector<8x256xf32> to vector<8x128xf32>
    %278 = arith.addf %276, %277 : vector<8x128xf32>
    %279 = arith.negf %278 : vector<8x128xf32>
    %280 = math.exp %279 : vector<8x128xf32>
    %cst_74 = arith.constant 1.000000e+00 : f32
    %281 = vector.broadcast %cst_74 : f32 to vector<8x128xf32>
    %282 = arith.addf %281, %280 : vector<8x128xf32>
    %283 = arith.divf %281, %282 : vector<8x128xf32>
    %284 = vector.extract_strided_slice %265 {offsets = [0, 256], sizes = [8, 128], strides = [1, 1]} : vector<8x384xf32> to vector<8x128xf32>
    %285 = arith.addf %267, %8 : vector<8x128xf32>
    %286 = arith.mulf %275, %285 : vector<8x128xf32>
    %287 = arith.addf %284, %286 : vector<8x128xf32>
    %288 = math.tanh %287 : vector<8x128xf32>
    %289 = arith.subf %262, %288 : vector<8x128xf32>
    %290 = arith.mulf %283, %289 : vector<8x128xf32>
    %291 = arith.addf %288, %290 : vector<8x128xf32>
    %292 = arith.index_cast %c7_i32 : i32 to index
    %c0_75 = arith.constant 0 : index
    %c0_76 = arith.constant 0 : index
    %293 = vector.load %arg6[%292, %c0_75, %c0_76] : memref<8x8x128xf32, #tpu.memory_space<vmem>>, vector<1x8x128xf32>
    %294 = vector.shape_cast %293 : vector<1x8x128xf32> to vector<8x128xf32>
    %295 = vector.shape_cast %291 : vector<8x128xf32> to vector<1x8x128xf32>
    tpu.vector_store %arg6[%292, %c0_75, %c0_76], %295 {strides = array<i32>} : memref<8x8x128xf32, #tpu.memory_space<vmem>>, vector<1x8x128xf32>,
    %296 = arith.addi %9, %c7_i32 : i32
    %c8_i32_77 = arith.constant 8 : i32
    %297 = arith.cmpi slt, %296, %c8_i32_77 : i32
    %298 = arith.select %297, %291, %262 : vector<8x128xf32>
    %c8_i32_78 = arith.constant 8 : i32
    %c0_79 = arith.constant 0 : index
    %c0_80 = arith.constant 0 : index
    %299 = vector.load %arg8[%c0_79, %c0_80] : memref<8x128xf32, #tpu.memory_space<vmem>>, vector<8x128xf32>
    tpu.vector_store %arg8[%c0_79, %c0_80], %298 {strides = array<i32>} : memref<8x128xf32, #tpu.memory_space<vmem>>, vector<8x128xf32>,
    %c0_81 = arith.constant 0 : index
    %c0_82 = arith.constant 0 : index
    %300 = vector.load %arg7[%c0_81, %c0_82] : memref<8x128xf32, #tpu.memory_space<vmem>>, vector<8x128xf32>
    tpu.vector_store %arg7[%c0_81, %c0_82], %298 {strides = array<i32>} : memref<8x128xf32, #tpu.memory_space<vmem>>, vector<8x128xf32>,
    return
  }
  func.func @transform_0(%arg0: i32, %arg1: i32) -> (i32, i32, i32) {
    %c0_i32 = arith.constant 0 : i32
    %c0_i32_0 = arith.constant 0 : i32
    return %arg1, %arg0, %c0_i32 : i32, i32, i32
  }
  func.func @transform_1(%arg0: i32, %arg1: i32) -> (i32, i32) {
    %c0_i32 = arith.constant 0 : i32
    %c0_i32_0 = arith.constant 0 : i32
    %c0_i32_1 = arith.constant 0 : i32
    return %c0_i32, %c0_i32_0 : i32, i32
  }
  func.func @transform_2(%arg0: i32, %arg1: i32) -> (i32, i32) {
    %c0_i32 = arith.constant 0 : i32
    %c0_i32_0 = arith.constant 0 : i32
    %c0_i32_1 = arith.constant 0 : i32
    return %c0_i32, %c0_i32_0 : i32, i32
  }
  func.func @transform_3(%arg0: i32, %arg1: i32) -> (i32, i32) {
    %c0_i32 = arith.constant 0 : i32
    %c0_i32_0 = arith.constant 0 : i32
    return %arg0, %c0_i32 : i32, i32
  }
  func.func @transform_4(%arg0: i32, %arg1: i32) -> (i32, i32, i32) {
    %c0_i32 = arith.constant 0 : i32
    %c0_i32_0 = arith.constant 0 : i32
    return %arg1, %arg0, %c0_i32 : i32, i32, i32
  }
  func.func @transform_5(%arg0: i32, %arg1: i32) -> (i32, i32) {
    %c0_i32 = arith.constant 0 : i32
    %c0_i32_0 = arith.constant 0 : i32
    return %arg0, %c0_i32 : i32, i32
  }
}

</mosaic_0001>

<bundles_post_ra>
// kernel: tpu_custom_call.1
= control target key start
LH: loop header
LB: loop body
LE: loop exit
PB: predicated region body
PF: predicated region fallthrough
CT: control target
= control target key end

     0   :  { %11 = vsyncpa [#allocation4], 0  ;;  %s3058_s0 = inlined_call_operand.hbm [shape: f32[8,8,384], index: 0, kind: input, shape index: {}]   ;;  %s3059_s1 = inlined_call_operand.hbm [shape: f32[128,384], index: 1, kind: input, shape index: {}]   ;;  %s3060_s2 = inlined_call_operand.vmem [shape: f32[1,128], index: 2, kind: input, shape index: {}]   ;;  %s3061_s3 = inlined_call_operand.hbm [shape: f32[8,128], index: 3, kind: input, shape index: {}]   ;;  %s3062_s4 = inlined_call_operand.hbm [shape: f32[8,8,128], index: 4, kind: output, shape index: {0}]   ;;  %s3063_s5 = inlined_call_operand.hbm [shape: f32[8,128], index: 5, kind: output, shape index: {1}]  }
   0x1   :  { %12 = vsyncpa [#allocation7], 0 }
   0x2   :  { %13 = vsyncpa [#allocation5], 0 }
   0x3   :  { %14 = vsyncpa [#allocation11], 0  ;;  %s2219_s18 = smov [#allocation6]   ;;  %s2220_s20 = smov [#allocation3]  }
   0x4   :  { %s32_s19 = sshll.u32 %s2219_s18, 4  ;;  %s20_s21 = sshll.u32 %s2220_s20, 4  ;;  %s33_s19 = int_to_ptr.vmem [resolvable:$true] %s32_s19  ;;  %s21_s21 = int_to_ptr.vmem [resolvable:$true] %s20_s21 }
   0x5   :  { %s2119_s22 = scalar_lea.vmem %s33_s19, 6144  ;;  %p2124_p1 = scmp.lt.s32.totalorder %s33_s19, %s33_s19 }
   0x6   :  { %p2120_p0 = scmp.ne.s32.totalorder %s33_s19, %s2119_s22  ;;  %p2125_p2 = scmp.lt.s32.totalorder %s2119_s22, %s2119_s22 }
   0x8   :  { %p2126_p3 = por %p2125_p2, %p2124_p1 }
   0xa   :  { %p2127_p4 = pnand %p2126_p3, %p2120_p0 }
   0xc   :  { %2130 = shalt.err (!%p2127_p4)
}
   0xd   :  { %s2221_s23 = smov 384   ;;  %s2222_s24 = smov 24  }
   0xe   :  { %38 = dma.hbm_to_vmem [thread:$0]  %s3059_s1, 6144, %s33_s19, [#allocation7], %s2221_s23, %s2221_s23, %s2222_s24  }
   0xf   :  { %s2139_s27 = scalar_lea.vmem %s21_s21, 3072  ;;  %p2144_p6 = scmp.lt.s32.totalorder %s21_s21, %s21_s21 }
  0x10   :  { %p2140_p5 = scmp.ne.s32.totalorder %s21_s21, %s2139_s27  ;;  %p2145_p7 = scmp.lt.s32.totalorder %s2139_s27, %s2139_s27 }
  0x12   :  { %p2146_p8 = por %p2145_p7, %p2144_p6 }
  0x14   :  { %p2147_p9 = pnand %p2146_p8, %p2140_p5 }
  0x16   :  { %2150 = shalt.err (!%p2147_p9)
}
  0x17   :  { %26 = dma.hbm_to_vmem [thread:$0]  %s3058_s0, 3072, %s21_s21, [#allocation4], %s2221_s23, %s2221_s23, %s2222_s24  }
  0x18   :  { %s2223_s30 = smov [#allocation8]  }
  0x19   :  { %s47_s6 = sshll.u32 %s2223_s30, 4  ;;  %s48_s6 = int_to_ptr.vmem [resolvable:$true] %s47_s6 }
  0x1a   :  { %s2159_s7 = scalar_lea.vmem %s48_s6, 128  ;;  %p2164_p11 = scmp.lt.s32.totalorder %s48_s6, %s48_s6 }
  0x1b   :  { %p2160_p10 = scmp.ne.s32.totalorder %s48_s6, %s2159_s7  ;;  %p2165_p12 = scmp.lt.s32.totalorder %s2159_s7, %s2159_s7 }
  0x1d   :  { %p2166_p13 = por %p2165_p12, %p2164_p11 }
  0x1f   :  { %p2167_p0 = pnand %p2166_p13, %p2160_p10 }
  0x21   :  { %2170 = shalt.err (!%p2167_p0)
}
  0x22   :  { %50 = dma.hbm_to_vmem [thread:$0]  %s3061_s3, 128, %s48_s6, [#allocation7]  }
  0x23   :  { %2211 = dma.done.wait [#allocation4], 3072  }
  0x24   :  { %2212 = vsyncadd [#allocation4], 4294964224 }
  0x25   :  { %2213 = dma.done.wait [#allocation7], 6272  }
  0x26   :  { %2214 = vsyncadd [#allocation7], 4294961024  ;;  %v3064_v0 = vmov 0.0   ;;  %vm2225_vm0 = vmmov 0   ;;  %v2273_v1 = vld [vmem:[#allocation6 + $0x170] sm:$0xff]  ;;  %v2275_v2 = vld [vmem:[#allocation6 + $0x168] sm:$0xff] }
  0x27   :  { %1691 = vmatprep.subr.mxu1 %v3064_v0  ;;  %190 = vmatprep.mubr.f32.mxu0 %v3064_v0  ;;  %3083 = vst [vmem:[#allocation16_spill] sm:$0xff] %v2273_v1  ;;  %v2277_v3 = vld [vmem:[#allocation6 + $0x158] sm:$0xff]  ;;  %v2280_v4 = vld [vmem:[#allocation6 + $0x150] sm:$0xff]  ;;  %v2283_v5 = vld [vmem:[#allocation6 + $0x140] sm:$0xff]  ;;  %s2227_s12 = smov [#allocation10]  }
  0x28   :  { %1723 = vmatprep.mubr.msk.f32.mxu1 %vm2225_vm0, %v3064_v0  ;;  %126 = vmatprep.subr.mxu0 %v2273_v1  ;;  %v2286_v6 = vld [vmem:[#allocation6 + $0x138] sm:$0xff]  ;;  %v2289_v7 = vld [vmem:[#allocation6 + $0x128] sm:$0xff]  ;;  %v2292_v8 = vld [vmem:[#allocation6 + $0x120] sm:$0xff]  ;;  %s1524_s13 = sshll.u32 %s2227_s12, 4  ;;  %s1525_s13 = int_to_ptr.vmem [resolvable:$true] %s1524_s13 }
  0x29   :  { %127 = vmatpush1.msra.mxu0 %v2275_v2  ;;  %v2295_v9 = vld [vmem:[#allocation6 + $0x110] sm:$0xff]  ;;  %v2298_v10 = vld [vmem:[#allocation6 + $0x108] sm:$0xff]  ;;  %v2301_v11 = vld [vmem:[#allocation6 + $0xf8] sm:$0xff] }
  0x2a   :  { %128 = vmatprep.subr.mxu0 %v2277_v3  ;;  %v2304_v12 = vld [vmem:[#allocation6 + $0xf0] sm:$0xff]  ;;  %v2307_v13 = vld [vmem:[#allocation6 + $0xe0] sm:$0xff]  ;;  %v2309_v14 = vld [vmem:[#allocation6 + $0x178] sm:$0xff] }
  0x2b   :  { %129 = vmatpush1.msra.mxu0 %v2280_v4  ;;  %v2312_v15 = vld [vmem:[#allocation6 + $0xd8] sm:$0xff]  ;;  %1692 = vmatpush3.msra.mxu1 %v2309_v14  ;;  %v2315_v16 = vld [vmem:[#allocation6 + $0x160] sm:$0xff]  ;;  %v2318_v17 = vld [vmem:[#allocation6 + $0xc8] sm:$0xff] }
  0x2c   :  { %130 = vmatprep.subr.mxu0 %v2283_v5  ;;  %1693 = vmatprep.subr.mxu1 %v3064_v0  ;;  %v2321_v18 = vld [vmem:[#allocation6 + $0x148] sm:$0xff]  ;;  %v2324_v19 = vld [vmem:[#allocation6 + $0xc0] sm:$0xff]  ;;  %v2328_v20 = vld [vmem:[#allocation6 + $0xb0] sm:$0xff] }
  0x2d   :  { %131 = vmatpush1.msra.mxu0 %v2286_v6  ;;  %1694 = vmatpush3.msra.mxu1 %v2315_v16  ;;  %v2331_v21 = vld [vmem:[#allocation6 + $0x130] sm:$0xff]  ;;  %v2334_v22 = vld [vmem:[#allocation6 + $0xa8] sm:$0xff]  ;;  %v2338_v23 = vld [vmem:[#allocation6 + $0x98] sm:$0xff] }
  0x2e   :  { %132 = vmatprep.subr.mxu0 %v2289_v7  ;;  %1695 = vmatprep.subr.mxu1 %v3064_v0  ;;  %v2341_v24 = vld [vmem:[#allocation6 + $0x118] sm:$0xff]  ;;  %v2344_v25 = vld [vmem:[#allocation6 + $0x90] sm:$0xff]  ;;  %v2348_v26 = vld [vmem:[#allocation6 + $0x80] sm:$0xff] }
  0x2f   :  { %133 = vmatpush1.msra.mxu0 %v2292_v8  ;;  %1696 = vmatpush3.msra.mxu1 %v2321_v18  ;;  %v2351_v27 = vld [vmem:[#allocation6 + $0x100] sm:$0xff]  ;;  %v2354_v28 = vld [vmem:[#allocation6 + $0x78] sm:$0xff]  ;;  %v2358_v29 = vld [vmem:[#allocation6 + $0x68] sm:$0xff] }
  0x30   :  { %134 = vmatprep.subr.mxu0 %v2295_v9  ;;  %1697 = vmatprep.subr.mxu1 %v3064_v0  ;;  %v2361_v30 = vld [vmem:[#allocation6 + $0xe8] sm:$0xff]  ;;  %v2364_v31 = vld [vmem:[#allocation6 + $0x60] sm:$0xff]  ;;  %v2368_v32 = vld [vmem:[#allocation6 + $0x50] sm:$0xff] }
  0x31   :  { %135 = vmatpush1.msra.mxu0 %v2298_v10  ;;  %1698 = vmatpush3.msra.mxu1 %v2331_v21  ;;  %v2371_v33 = vld [vmem:[#allocation6 + $0xd0] sm:$0xff]  ;;  %v2374_v34 = vld [vmem:[#allocation6 + $0x48] sm:$0xff]  ;;  %v2378_v35 = vld [vmem:[#allocation6 + $0x38] sm:$0xff] }
  0x32   :  { %136 = vmatprep.subr.mxu0 %v2301_v11  ;;  %1699 = vmatprep.subr.mxu1 %v3064_v0  ;;  %v2381_v36 = vld [vmem:[#allocation6 + $0xb8] sm:$0xff]  ;;  %v2384_v37 = vld [vmem:[#allocation6 + $0x30] sm:$0xff]  ;;  %v2388_v38 = vld [vmem:[#allocation6 + $0x20] sm:$0xff] }
  0x33   :  { %137 = vmatpush1.msra.mxu0 %v2304_v12  ;;  %1700 = vmatpush3.msra.mxu1 %v2341_v24  ;;  %v2391_v39 = vld [vmem:[#allocation6 + $0xa0] sm:$0xff]  ;;  %v2394_v40 = vld [vmem:[#allocation6 + $0x18] sm:$0xff]  ;;  %v2398_v41 = vld [vmem:[#allocation6 + $0x8] sm:$0xff] }
  0x34   :  { %138 = vmatprep.subr.mxu0 %v2307_v13  ;;  %1701 = vmatprep.subr.mxu1 %v3064_v0  ;;  %3084 = vst [vmem:[#allocation17_spill] sm:$0xff] %v2394_v40  ;;  %3085 = vst [vmem:[#allocation18_spill] sm:$0xff] %v2398_v41  ;;  %v2401_v42 = vld [vmem:[#allocation6 + $0x88] sm:$0xff]  ;;  %v2404_v43 = vld [vmem:[#allocation6] sm:$0xff] }
  0x35   :  { %139 = vmatpush1.msra.mxu0 %v2312_v15  ;;  %1702 = vmatpush3.msra.mxu1 %v2351_v27  ;;  %3086 = vst [vmem:[#allocation19_spill] sm:$0xff] %v2404_v43  ;;  %v2408_v44 = vld [vmem:[#allocation8] sm:$0xff]  ;;  %v2411_v45 = vld [vmem:[#allocation6 + $0x70] sm:$0xff]  ;;  %v2417_v46 = vld [vmem:[#allocation6 + $0x58] sm:$0xff] }
  0x36   :  { %140 = vmatprep.subr.mxu0 %v2318_v17  ;;  %1703 = vmatprep.subr.mxu1 %v3064_v0  ;;  %v2422_v47 = vld [vmem:[#allocation6 + $0x40] sm:$0xff]  ;;  %v2428_v48 = vld [vmem:[#allocation6 + $0x28] sm:$0xff]  ;;  %v2434_v49 = vld [vmem:[#allocation6 + $0x10] sm:$0xff] }
  0x37   :  { %141 = vmatpush1.msra.mxu0 %v2324_v19  ;;  %1704 = vmatpush3.msra.mxu1 %v2361_v30  ;;  %3087 = vst [vmem:[#allocation20_spill] sm:$0xff] %v2428_v48  ;;  %3088 = vst [vmem:[#allocation21_spill] sm:$0xff] %v2434_v49  ;;  %v123_v50 = vld [vmem:[#allocation3] sm:$0xff]  ;;  %v124_v54 = vld [vmem:[#allocation3 + $0x8] sm:$0xff] }
  0x38   :  { %142 = vmatprep.subr.mxu0 %v2328_v20  ;;  %1705 = vmatprep.subr.mxu1 %v3064_v0  ;;  %v2508_v62 = vld [vmem:[%s3060_s2] ss:$0 sm:$0xff] }
  0x39   :  { %143 = vmatpush1.msra.mxu0 %v2334_v22  ;;  %1706 = vmatpush3.msra.mxu1 %v2371_v33 }
  0x3a   :  { %144 = vmatprep.subr.mxu0 %v2338_v23  ;;  %1707 = vmatprep.subr.mxu1 %v3064_v0 }
  0x3b   :  { %145 = vmatpush1.msra.mxu0 %v2344_v25  ;;  %1708 = vmatpush3.msra.mxu1 %v2381_v36 }
  0x3c   :  { %146 = vmatprep.subr.mxu0 %v2348_v26  ;;  %1709 = vmatprep.subr.mxu1 %v3064_v0 }
  0x3d   :  { %147 = vmatpush1.msra.mxu0 %v2354_v28  ;;  %1710 = vmatpush3.msra.mxu1 %v2391_v39 }
  0x3e   :  { %148 = vmatprep.subr.mxu0 %v2358_v29  ;;  %1711 = vmatprep.subr.mxu1 %v3064_v0 }
  0x3f   :  { %149 = vmatpush1.msra.mxu0 %v2364_v31  ;;  %1712 = vmatpush3.msra.mxu1 %v2401_v42 }
  0x40   :  { %150 = vmatprep.subr.mxu0 %v2368_v32  ;;  %1713 = vmatprep.subr.mxu1 %v3064_v0 }
  0x41   :  { %151 = vmatpush1.msra.mxu0 %v2374_v34  ;;  %1714 = vmatpush3.msra.mxu1 %v2411_v45 }
  0x42   :  { %152 = vmatprep.subr.mxu0 %v2378_v35  ;;  %1715 = vmatprep.subr.mxu1 %v3064_v0 }
  0x43   :  { %153 = vmatpush1.msra.mxu0 %v2384_v37  ;;  %1716 = vmatpush3.msra.mxu1 %v2417_v46 }
  0x44   :  { %154 = vmatprep.subr.mxu0 %v2388_v38  ;;  %1717 = vmatprep.subr.mxu1 %v3064_v0 }
  0x45   :  { %155 = vmatpush1.msra.mxu0 %v2394_v40  ;;  %1718 = vmatpush3.msra.mxu1 %v2422_v47 }
  0x46   :  { %156 = vmatprep.subr.mxu0 %v2398_v41  ;;  %1719 = vmatprep.subr.mxu1 %v3064_v0 }
  0x47   :  { %157 = vmatpush1.msra.mxu0 %v2404_v43  ;;  %1720 = vmatpush3.msra.mxu1 %v2428_v48 }
  0x48   :  { %191 = vmatmul.mubr.f32.vlgmr.msra.gmra.mxu0 %v2408_v44  ;;  %297 = vmatprep.subr.mxu0 %v2273_v1 }
  0x49   :  { %298 = vmatpush1.msra.mxu0 %v2275_v2  ;;  %1721 = vmatprep.subr.mxu1 %v3064_v0 }
  0x4a   :  { %299 = vmatprep.subr.mxu0 %v2277_v3  ;;  %1722 = vmatpush3.msra.mxu1 %v2434_v49 }
  0x4b   :  { %300 = vmatpush1.msra.mxu0 %v2280_v4  ;;  %1724 = vmatmul.mubr.f32.vlgmr.msra.gmra.mxu1 %v2408_v44 }
  0x4c   :  { %301 = vmatprep.subr.mxu0 %v2283_v5  ;;  %1726 = vmatprep.subr.mxu1 %v3064_v0 }
  0x4d   :  { %302 = vmatpush1.msra.mxu0 %v2286_v6  ;;  %1727 = vmatpush3.msra.mxu1 %v2309_v14 }
  0x4e   :  { %303 = vmatprep.subr.mxu0 %v2289_v7  ;;  %1728 = vmatprep.subr.mxu1 %v3064_v0 }
  0x4f   :  { %304 = vmatpush1.msra.mxu0 %v2292_v8  ;;  %1729 = vmatpush3.msra.mxu1 %v2315_v16 }
  0x50   :  { %305 = vmatprep.subr.mxu0 %v2295_v9  ;;  %1730 = vmatprep.subr.mxu1 %v3064_v0 }
  0x51   :  { %306 = vmatpush1.msra.mxu0 %v2298_v10  ;;  %1731 = vmatpush3.msra.mxu1 %v2321_v18 }
  0x52   :  { %307 = vmatprep.subr.mxu0 %v2301_v11  ;;  %1732 = vmatprep.subr.mxu1 %v3064_v0 }
  0x53   :  { %308 = vmatpush1.msra.mxu0 %v2304_v12  ;;  %1733 = vmatpush3.msra.mxu1 %v2331_v21 }
  0x54   :  { %309 = vmatprep.subr.mxu0 %v2307_v13  ;;  %1734 = vmatprep.subr.mxu1 %v3064_v0 }
  0x55   :  { %310 = vmatpush1.msra.mxu0 %v2312_v15  ;;  %1735 = vmatpush3.msra.mxu1 %v2341_v24 }
  0x56   :  { %311 = vmatprep.subr.mxu0 %v2318_v17  ;;  %1736 = vmatprep.subr.mxu1 %v3064_v0 }
  0x57   :  { %312 = vmatpush1.msra.mxu0 %v2324_v19  ;;  %1737 = vmatpush3.msra.mxu1 %v2351_v27 }
  0x58   :  { %313 = vmatprep.subr.mxu0 %v2328_v20  ;;  %1738 = vmatprep.subr.mxu1 %v3064_v0 }
  0x59   :  { %314 = vmatpush1.msra.mxu0 %v2334_v22  ;;  %1739 = vmatpush3.msra.mxu1 %v2361_v30 }
  0x5a   :  { %315 = vmatprep.subr.mxu0 %v2338_v23  ;;  %1740 = vmatprep.subr.mxu1 %v3064_v0 }
  0x5b   :  { %316 = vmatpush1.msra.mxu0 %v2344_v25  ;;  %1741 = vmatpush3.msra.mxu1 %v2371_v33 }
  0x5c   :  { %317 = vmatprep.subr.mxu0 %v2348_v26  ;;  %1742 = vmatprep.subr.mxu1 %v3064_v0 }
  0x5d   :  { %318 = vmatpush1.msra.mxu0 %v2354_v28  ;;  %1743 = vmatpush3.msra.mxu1 %v2381_v36 }
  0x5e   :  { %319 = vmatprep.subr.mxu0 %v2358_v29  ;;  %1744 = vmatprep.subr.mxu1 %v3064_v0 }
  0x5f   :  { %320 = vmatpush1.msra.mxu0 %v2364_v31  ;;  %1745 = vmatpush3.msra.mxu1 %v2391_v39 }
  0x60   :  { %321 = vmatprep.subr.mxu0 %v2368_v32  ;;  %1746 = vmatprep.subr.mxu1 %v3064_v0 }
  0x61   :  { %322 = vmatpush1.msra.mxu0 %v2374_v34  ;;  %1747 = vmatpush3.msra.mxu1 %v2401_v42 }
  0x62   :  { %323 = vmatprep.subr.mxu0 %v2378_v35  ;;  %1748 = vmatprep.subr.mxu1 %v3064_v0 }
  0x63   :  { %324 = vmatpush1.msra.mxu0 %v2384_v37  ;;  %1749 = vmatpush3.msra.mxu1 %v2411_v45 }
  0x64   :  { %325 = vmatprep.subr.mxu0 %v2388_v38  ;;  %1750 = vmatprep.subr.mxu1 %v3064_v0 }
  0x65   :  { %326 = vmatpush1.msra.mxu0 %v2394_v40  ;;  %1751 = vmatpush3.msra.mxu1 %v2417_v46 }
  0x66   :  { %327 = vmatprep.subr.mxu0 %v2398_v41  ;;  %361 = vmatprep.mubr.f32.mxu0 %v3064_v0 }
  0x67   :  { %328 = vmatpush1.msra.mxu0 %v2404_v43  ;;  %1752 = vmatprep.subr.mxu1 %v3064_v0 }
  0x68   :  { %1758 = vmatprep.mubr.msk.f32.mxu1 %vm2225_vm0, %v3064_v0  ;;  %1753 = vmatpush3.msra.mxu1 %v2422_v47 }
  0x69   :  { %470 = vmatprep.subr.mxu0 %v2273_v1  ;;  %1754 = vmatprep.subr.mxu1 %v3064_v0 }
  0x6a   :  { %1755 = vmatpush3.msra.mxu1 %v2428_v48 }
  0x6b   :  { %1756 = vmatprep.subr.mxu1 %v3064_v0 }
  0x6c   :  { %1757 = vmatpush3.msra.mxu1 %v2434_v49 }
  0x6d   :  { %1761 = vmatprep.subr.mxu1 %v3064_v0 }
 0x108   :  { %v192_v51 = vpop.f32.mrf.mxu0 }
 0x109   :  { %v197_v52 = vadd.f32 %v192_v51, %v123_v50 }
 0x10a   :  { %v194_v55 = vpop.f32.mrf.mxu0 }
 0x10b   :  { %v1539_v53 = vmul.f32 -1.442695, %v197_v52  ;;  %v277_v56 = vpop.f32.mrf.mxu1  ;;  %v204_v58 = vadd.f32 %v194_v55, %v124_v54  ;;  %v125_v52 = vld [vmem:[#allocation3 + $0x10] sm:$0xff] }
 0x10c   :  { %v278_v63 = vadd.f32 %v2508_v62, %v277_v56 }
 0x10d   :  { %1982 = vpow2.f32 %v1539_v53  ;;  %v1725_v57 = vpop.f32.mrf.mxu1  ;;  %v1540_v59 = vmul.f32 -1.442695, %v204_v58 }
 0x10f   :  { %1984 = vpow2.f32 %v1540_v59 }
 0x11a   :  { %v1983_v60 = vpop.eup %1982 }
 0x11b   :  { %v201_v61 = vadd.f32 1.0, %v1983_v60 }
 0x11c   :  { %v1985_v50 = vpop.eup %1984 }
 0x11d   :  { %1986 = vrcp.f32 %v201_v61  ;;  %v208_v0 = vadd.f32 1.0, %v1985_v50 }
 0x12a   :  { %v1987_v51 = vpop.eup %1986 }
 0x12b   :  { %v281_v53 = vmul.f32 %v1987_v51, %v278_v63  ;;  %v295_v51 = vld [vmem:[#allocation3 + $0x20] sm:$0xff] }
 0x12d   :  { %v282_v1 = vadd.f32 %v281_v53, %v125_v52 }
 0x12f   :  { %1988 = vtanh.f32 %v282_v1  ;;  %v3090_v1 = vld [vmem:[#allocation16_spill] sm:$0xff] }
 0x130   :  { %1990 = vrcp.f32 %v208_v0  ;;  %v3089_v0 = vmov 0.0  }
 0x13c   :  { %v1989_v54 = vpop.eup %1988 }
 0x13d   :  { %v284_v55 = vsub.f32 %v2408_v44, %v1989_v54  ;;  %v1991_v57 = vpop.eup %1990  ;;  %v294_v44 = vld [vmem:[#allocation3 + $0x18] sm:$0xff] }
 0x13f   :  { %v285_v58 = vmul.f32 %v1991_v57, %v284_v55 }
 0x141   :  { %v2512_v59 = vadd.f32 %v1989_v54, %v285_v58 }
 0x143   :  { %287 = vst [vmem:[#allocation9] sm:$0xff] %v2512_v59  ;;  %362 = vmatmul.mubr.f32.vlgmr.msra.gmra.mxu0 %v2512_v59  ;;  %1759 = vmatmul.mubr.f32.vlgmr.msra.gmra.mxu1 %v2512_v59 }
 0x144   :  { %471 = vmatpush1.msra.mxu0 %v2275_v2  ;;  %1762 = vmatpush3.msra.mxu1 %v2309_v14 }
 0x145   :  { %472 = vmatprep.subr.mxu0 %v2277_v3  ;;  %1763 = vmatprep.subr.mxu1 %v3089_v0 }
 0x146   :  { %473 = vmatpush1.msra.mxu0 %v2280_v4  ;;  %1764 = vmatpush3.msra.mxu1 %v2315_v16 }
 0x147   :  { %474 = vmatprep.subr.mxu0 %v2283_v5  ;;  %1765 = vmatprep.subr.mxu1 %v3089_v0 }
 0x148   :  { %475 = vmatpush1.msra.mxu0 %v2286_v6  ;;  %1766 = vmatpush3.msra.mxu1 %v2321_v18 }
 0x149   :  { %476 = vmatprep.subr.mxu0 %v2289_v7  ;;  %1767 = vmatprep.subr.mxu1 %v3089_v0 }
 0x14a   :  { %477 = vmatpush1.msra.mxu0 %v2292_v8  ;;  %1768 = vmatpush3.msra.mxu1 %v2331_v21 }
 0x14b   :  { %478 = vmatprep.subr.mxu0 %v2295_v9  ;;  %1769 = vmatprep.subr.mxu1 %v3089_v0 }
 0x14c   :  { %479 = vmatpush1.msra.mxu0 %v2298_v10  ;;  %1770 = vmatpush3.msra.mxu1 %v2341_v24 }
 0x14d   :  { %480 = vmatprep.subr.mxu0 %v2301_v11  ;;  %1771 = vmatprep.subr.mxu1 %v3089_v0 }
 0x14e   :  { %481 = vmatpush1.msra.mxu0 %v2304_v12  ;;  %1772 = vmatpush3.msra.mxu1 %v2351_v27 }
 0x14f   :  { %482 = vmatprep.subr.mxu0 %v2307_v13  ;;  %1773 = vmatprep.subr.mxu1 %v3089_v0 }
 0x150   :  { %483 = vmatpush1.msra.mxu0 %v2312_v15  ;;  %1774 = vmatpush3.msra.mxu1 %v2361_v30 }
 0x151   :  { %484 = vmatprep.subr.mxu0 %v2318_v17  ;;  %1775 = vmatprep.subr.mxu1 %v3089_v0 }
 0x152   :  { %485 = vmatpush1.msra.mxu0 %v2324_v19  ;;  %1776 = vmatpush3.msra.mxu1 %v2371_v33 }
 0x153   :  { %486 = vmatprep.subr.mxu0 %v2328_v20  ;;  %1777 = vmatprep.subr.mxu1 %v3089_v0 }
 0x154   :  { %487 = vmatpush1.msra.mxu0 %v2334_v22  ;;  %1778 = vmatpush3.msra.mxu1 %v2381_v36 }
 0x155   :  { %488 = vmatprep.subr.mxu0 %v2338_v23  ;;  %1779 = vmatprep.subr.mxu1 %v3089_v0 }
 0x156   :  { %489 = vmatpush1.msra.mxu0 %v2344_v25  ;;  %1780 = vmatpush3.msra.mxu1 %v2391_v39 }
 0x157   :  { %490 = vmatprep.subr.mxu0 %v2348_v26  ;;  %1781 = vmatprep.subr.mxu1 %v3089_v0 }
 0x158   :  { %491 = vmatpush1.msra.mxu0 %v2354_v28  ;;  %1782 = vmatpush3.msra.mxu1 %v2401_v42 }
 0x159   :  { %492 = vmatprep.subr.mxu0 %v2358_v29  ;;  %1783 = vmatprep.subr.mxu1 %v3089_v0 }
 0x15a   :  { %493 = vmatpush1.msra.mxu0 %v2364_v31  ;;  %1784 = vmatpush3.msra.mxu1 %v2411_v45 }
 0x15b   :  { %494 = vmatprep.subr.mxu0 %v2368_v32  ;;  %1785 = vmatprep.subr.mxu1 %v3089_v0 }
 0x15c   :  { %495 = vmatpush1.msra.mxu0 %v2374_v34  ;;  %1786 = vmatpush3.msra.mxu1 %v2417_v46 }
 0x15d   :  { %496 = vmatprep.subr.mxu0 %v2378_v35  ;;  %1787 = vmatprep.subr.mxu1 %v3089_v0 }
 0x15e   :  { %497 = vmatpush1.msra.mxu0 %v2384_v37  ;;  %1788 = vmatpush3.msra.mxu1 %v2422_v47 }
 0x15f   :  { %498 = vmatprep.subr.mxu0 %v2388_v38  ;;  %1789 = vmatprep.subr.mxu1 %v3089_v0 }
 0x160   :  { %499 = vmatpush1.msra.mxu0 %v2394_v40  ;;  %1790 = vmatpush3.msra.mxu1 %v2428_v48 }
 0x161   :  { %500 = vmatprep.subr.mxu0 %v2398_v41  ;;  %1791 = vmatprep.subr.mxu1 %v3089_v0 }
 0x162   :  { %501 = vmatpush1.msra.mxu0 %v2404_v43  ;;  %534 = vmatprep.mubr.f32.mxu0 %v3089_v0  ;;  %v296_v43 = vld [vmem:[#allocation3 + $0x28] sm:$0xff] }
 0x163   :  { %1792 = vmatpush3.msra.mxu1 %v2434_v49  ;;  %1793 = vmatprep.mubr.msk.f32.mxu1 %vm2225_vm0, %v3089_v0 }
 0x164   :  { %643 = vmatprep.subr.mxu0 %v3090_v1  ;;  %1796 = vmatprep.subr.mxu1 %v3089_v0 }
 0x203   :  { %v363_v56 = vpop.f32.mrf.mxu0  ;;  %v448_v60 = vpop.f32.mrf.mxu1 }
 0x204   :  { %v368_v61 = vadd.f32 %v363_v56, %v294_v44  ;;  %v449_v1 = vadd.f32 %v2508_v62, %v448_v60 }
 0x205   :  { %v1760_v63 = vpop.f32.mrf.mxu1  ;;  %v365_v52 = vpop.f32.mrf.mxu0 }
 0x206   :  { %v1541_v50 = vmul.f32 -1.442695, %v368_v61  ;;  %v375_v53 = vadd.f32 %v365_v52, %v295_v51 }
 0x208   :  { %1992 = vpow2.f32 %v1541_v50  ;;  %v1542_v54 = vmul.f32 -1.442695, %v375_v53 }
 0x20a   :  { %1994 = vpow2.f32 %v1542_v54 }
 0x215   :  { %v1993_v55 = vpop.eup %1992 }
 0x216   :  { %v372_v57 = vadd.f32 1.0, %v1993_v55  ;;  %v468_v55 = vld [vmem:[#allocation3 + $0x38] sm:$0xff] }
 0x217   :  { %v1995_v58 = vpop.eup %1994 }
 0x218   :  { %1996 = vrcp.f32 %v372_v57  ;;  %v379_v40 = vadd.f32 1.0, %v1995_v58 }
 0x225   :  { %v1997_v49 = vpop.eup %1996 }
 0x226   :  { %v452_v41 = vmul.f32 %v1997_v49, %v449_v1  ;;  %v3095_v49 = vld [vmem:[#allocation21_spill] sm:$0xff]  ;;  %v467_v1 = vld [vmem:[#allocation3 + $0x30] sm:$0xff] }
 0x228   :  { %v453_v48 = vadd.f32 %v452_v41, %v296_v43  ;;  %v3092_v41 = vld [vmem:[#allocation20_spill] sm:$0xff]  ;;  %v3093_v43 = vld [vmem:[#allocation18_spill] sm:$0xff] }
 0x22a   :  { %1998 = vtanh.f32 %v453_v48  ;;  %v3094_v48 = vld [vmem:[#allocation19_spill] sm:$0xff] }
 0x22b   :  { %2000 = vrcp.f32 %v379_v40  ;;  %v3091_v40 = vld [vmem:[#allocation17_spill] sm:$0xff] }
 0x237   :  { %v1999_v44 = vpop.eup %1998 }
 0x238   :  { %v455_v56 = vsub.f32 %v2512_v59, %v1999_v44  ;;  %v2001_v61 = vpop.eup %2000  ;;  %v3096_v59 = vld [vmem:[#allocation16_spill] sm:$0xff] }
 0x23a   :  { %v456_v63 = vmul.f32 %v2001_v61, %v455_v56 }
 0x23c   :  { %v2586_v50 = vadd.f32 %v1999_v44, %v456_v63 }
 0x23e   :  { %459 = vst [vmem:[#allocation9 + $0x8] sm:$0xff] %v2586_v50  ;;  %535 = vmatmul.mubr.f32.vlgmr.msra.gmra.mxu0 %v2586_v50  ;;  %1794 = vmatmul.mubr.f32.vlgmr.msra.gmra.mxu1 %v2586_v50 }
 0x23f   :  { %644 = vmatpush1.msra.mxu0 %v2275_v2  ;;  %1797 = vmatpush3.msra.mxu1 %v2309_v14 }
 0x240   :  { %645 = vmatprep.subr.mxu0 %v2277_v3  ;;  %1798 = vmatprep.subr.mxu1 %v3089_v0 }
 0x241   :  { %646 = vmatpush1.msra.mxu0 %v2280_v4  ;;  %1799 = vmatpush3.msra.mxu1 %v2315_v16 }
 0x242   :  { %647 = vmatprep.subr.mxu0 %v2283_v5  ;;  %1800 = vmatprep.subr.mxu1 %v3089_v0 }
 0x243   :  { %648 = vmatpush1.msra.mxu0 %v2286_v6  ;;  %1801 = vmatpush3.msra.mxu1 %v2321_v18 }
 0x244   :  { %649 = vmatprep.subr.mxu0 %v2289_v7  ;;  %1802 = vmatprep.subr.mxu1 %v3089_v0 }
 0x245   :  { %650 = vmatpush1.msra.mxu0 %v2292_v8  ;;  %1803 = vmatpush3.msra.mxu1 %v2331_v21 }
 0x246   :  { %651 = vmatprep.subr.mxu0 %v2295_v9  ;;  %1804 = vmatprep.subr.mxu1 %v3089_v0 }
 0x247   :  { %652 = vmatpush1.msra.mxu0 %v2298_v10  ;;  %1805 = vmatpush3.msra.mxu1 %v2341_v24 }
 0x248   :  { %653 = vmatprep.subr.mxu0 %v2301_v11  ;;  %1806 = vmatprep.subr.mxu1 %v3089_v0 }
 0x249   :  { %654 = vmatpush1.msra.mxu0 %v2304_v12  ;;  %1807 = vmatpush3.msra.mxu1 %v2351_v27 }
 0x24a   :  { %655 = vmatprep.subr.mxu0 %v2307_v13  ;;  %1808 = vmatprep.subr.mxu1 %v3089_v0 }
 0x24b   :  { %656 = vmatpush1.msra.mxu0 %v2312_v15  ;;  %1809 = vmatpush3.msra.mxu1 %v2361_v30 }
 0x24c   :  { %657 = vmatprep.subr.mxu0 %v2318_v17  ;;  %1810 = vmatprep.subr.mxu1 %v3089_v0 }
 0x24d   :  { %658 = vmatpush1.msra.mxu0 %v2324_v19  ;;  %1811 = vmatpush3.msra.mxu1 %v2371_v33 }
 0x24e   :  { %659 = vmatprep.subr.mxu0 %v2328_v20  ;;  %1812 = vmatprep.subr.mxu1 %v3089_v0 }
 0x24f   :  { %660 = vmatpush1.msra.mxu0 %v2334_v22  ;;  %1813 = vmatpush3.msra.mxu1 %v2381_v36 }
 0x250   :  { %661 = vmatprep.subr.mxu0 %v2338_v23  ;;  %1814 = vmatprep.subr.mxu1 %v3089_v0 }
 0x251   :  { %662 = vmatpush1.msra.mxu0 %v2344_v25  ;;  %1815 = vmatpush3.msra.mxu1 %v2391_v39 }
 0x252   :  { %663 = vmatprep.subr.mxu0 %v2348_v26  ;;  %1816 = vmatprep.subr.mxu1 %v3089_v0 }
 0x253   :  { %664 = vmatpush1.msra.mxu0 %v2354_v28  ;;  %1817 = vmatpush3.msra.mxu1 %v2401_v42 }
 0x254   :  { %665 = vmatprep.subr.mxu0 %v2358_v29  ;;  %1818 = vmatprep.subr.mxu1 %v3089_v0 }
 0x255   :  { %666 = vmatpush1.msra.mxu0 %v2364_v31  ;;  %1819 = vmatpush3.msra.mxu1 %v2411_v45 }
 0x256   :  { %667 = vmatprep.subr.mxu0 %v2368_v32  ;;  %1820 = vmatprep.subr.mxu1 %v3089_v0 }
 0x257   :  { %668 = vmatpush1.msra.mxu0 %v2374_v34  ;;  %1821 = vmatpush3.msra.mxu1 %v2417_v46 }
 0x258   :  { %669 = vmatprep.subr.mxu0 %v2378_v35  ;;  %1822 = vmatprep.subr.mxu1 %v3089_v0 }
 0x259   :  { %670 = vmatpush1.msra.mxu0 %v2384_v37  ;;  %1823 = vmatpush3.msra.mxu1 %v2422_v47 }
 0x25a   :  { %671 = vmatprep.subr.mxu0 %v2388_v38  ;;  %1824 = vmatprep.subr.mxu1 %v3089_v0 }
 0x25b   :  { %672 = vmatpush1.msra.mxu0 %v3091_v40  ;;  %1825 = vmatpush3.msra.mxu1 %v3092_v41 }
 0x25c   :  { %673 = vmatprep.subr.mxu0 %v3093_v43  ;;  %1826 = vmatprep.subr.mxu1 %v3089_v0 }
 0x25d   :  { %674 = vmatpush1.msra.mxu0 %v3094_v48  ;;  %707 = vmatprep.mubr.f32.mxu0 %v3089_v0  ;;  %v469_v48 = vld [vmem:[#allocation3 + $0x40] sm:$0xff] }
 0x25e   :  { %1827 = vmatpush3.msra.mxu1 %v3095_v49  ;;  %1828 = vmatprep.mubr.msk.f32.mxu1 %vm2225_vm0, %v3089_v0 }
 0x25f   :  { %816 = vmatprep.subr.mxu0 %v3096_v59  ;;  %1831 = vmatprep.subr.mxu1 %v3089_v0 }
 0x2fe   :  { %v536_v60 = vpop.f32.mrf.mxu0  ;;  %v621_v51 = vpop.f32.mrf.mxu1 }
 0x2ff   :  { %v541_v52 = vadd.f32 %v536_v60, %v467_v1  ;;  %v622_v59 = vadd.f32 %v2508_v62, %v621_v51 }
 0x300   :  { %v1795_v53 = vpop.f32.mrf.mxu1  ;;  %v538_v57 = vpop.f32.mrf.mxu0 }
 0x301   :  { %v1543_v54 = vmul.f32 -1.442695, %v541_v52  ;;  %v548_v58 = vadd.f32 %v538_v57, %v468_v55 }
 0x303   :  { %2002 = vpow2.f32 %v1543_v54  ;;  %v1544_v44 = vmul.f32 -1.442695, %v548_v58 }
 0x305   :  { %2004 = vpow2.f32 %v1544_v44 }
 0x310   :  { %v2003_v56 = vpop.eup %2002 }
 0x311   :  { %v545_v61 = vadd.f32 1.0, %v2003_v56  ;;  %v641_v56 = vld [vmem:[#allocation3 + $0x50] sm:$0xff] }
 0x312   :  { %v2005_v63 = vpop.eup %2004 }
 0x313   :  { %2006 = vrcp.f32 %v545_v61  ;;  %v552_v40 = vadd.f32 1.0, %v2005_v63 }
 0x320   :  { %v2007_v49 = vpop.eup %2006 }
 0x321   :  { %v625_v43 = vmul.f32 %v2007_v49, %v622_v59  ;;  %v3102_v49 = vld [vmem:[#allocation16_spill] sm:$0xff]  ;;  %v640_v59 = vld [vmem:[#allocation3 + $0x48] sm:$0xff] }
 0x323   :  { %v626_v41 = vadd.f32 %v625_v43, %v469_v48  ;;  %v3100_v43 = vld [vmem:[#allocation19_spill] sm:$0xff]  ;;  %v3101_v48 = vld [vmem:[#allocation21_spill] sm:$0xff] }
 0x325   :  { %2008 = vtanh.f32 %v626_v41  ;;  %v3099_v41 = vld [vmem:[#allocation18_spill] sm:$0xff] }
 0x326   :  { %2010 = vrcp.f32 %v552_v40  ;;  %v3098_v40 = vld [vmem:[#allocation20_spill] sm:$0xff] }
 0x332   :  { %v2009_v1 = vpop.eup %2008 }
 0x333   :  { %v628_v60 = vsub.f32 %v2586_v50, %v2009_v1  ;;  %v2011_v52 = vpop.eup %2010  ;;  %v3097_v50 = vld [vmem:[#allocation17_spill] sm:$0xff] }
 0x335   :  { %v629_v53 = vmul.f32 %v2011_v52, %v628_v60 }
 0x337   :  { %v2660_v54 = vadd.f32 %v2009_v1, %v629_v53 }
 0x339   :  { %632 = vst [vmem:[#allocation9 + $0x10] sm:$0xff] %v2660_v54  ;;  %708 = vmatmul.mubr.f32.vlgmr.msra.gmra.mxu0 %v2660_v54  ;;  %1829 = vmatmul.mubr.f32.vlgmr.msra.gmra.mxu1 %v2660_v54 }
 0x33a   :  { %817 = vmatpush1.msra.mxu0 %v2275_v2  ;;  %1832 = vmatpush3.msra.mxu1 %v2309_v14 }
 0x33b   :  { %818 = vmatprep.subr.mxu0 %v2277_v3  ;;  %1833 = vmatprep.subr.mxu1 %v3089_v0 }
 0x33c   :  { %819 = vmatpush1.msra.mxu0 %v2280_v4  ;;  %1834 = vmatpush3.msra.mxu1 %v2315_v16 }
 0x33d   :  { %820 = vmatprep.subr.mxu0 %v2283_v5  ;;  %1835 = vmatprep.subr.mxu1 %v3089_v0 }
 0x33e   :  { %821 = vmatpush1.msra.mxu0 %v2286_v6  ;;  %1836 = vmatpush3.msra.mxu1 %v2321_v18 }
 0x33f   :  { %822 = vmatprep.subr.mxu0 %v2289_v7  ;;  %1837 = vmatprep.subr.mxu1 %v3089_v0 }
 0x340   :  { %823 = vmatpush1.msra.mxu0 %v2292_v8  ;;  %1838 = vmatpush3.msra.mxu1 %v2331_v21 }
 0x341   :  { %824 = vmatprep.subr.mxu0 %v2295_v9  ;;  %1839 = vmatprep.subr.mxu1 %v3089_v0 }
 0x342   :  { %825 = vmatpush1.msra.mxu0 %v2298_v10  ;;  %1840 = vmatpush3.msra.mxu1 %v2341_v24 }
 0x343   :  { %826 = vmatprep.subr.mxu0 %v2301_v11  ;;  %1841 = vmatprep.subr.mxu1 %v3089_v0 }
 0x344   :  { %827 = vmatpush1.msra.mxu0 %v2304_v12  ;;  %1842 = vmatpush3.msra.mxu1 %v2351_v27 }
 0x345   :  { %828 = vmatprep.subr.mxu0 %v2307_v13  ;;  %1843 = vmatprep.subr.mxu1 %v3089_v0 }
 0x346   :  { %829 = vmatpush1.msra.mxu0 %v2312_v15  ;;  %1844 = vmatpush3.msra.mxu1 %v2361_v30 }
 0x347   :  { %830 = vmatprep.subr.mxu0 %v2318_v17  ;;  %1845 = vmatprep.subr.mxu1 %v3089_v0 }
 0x348   :  { %831 = vmatpush1.msra.mxu0 %v2324_v19  ;;  %1846 = vmatpush3.msra.mxu1 %v2371_v33 }
 0x349   :  { %832 = vmatprep.subr.mxu0 %v2328_v20  ;;  %1847 = vmatprep.subr.mxu1 %v3089_v0 }
 0x34a   :  { %833 = vmatpush1.msra.mxu0 %v2334_v22  ;;  %1848 = vmatpush3.msra.mxu1 %v2381_v36 }
 0x34b   :  { %834 = vmatprep.subr.mxu0 %v2338_v23  ;;  %1849 = vmatprep.subr.mxu1 %v3089_v0 }
 0x34c   :  { %835 = vmatpush1.msra.mxu0 %v2344_v25  ;;  %1850 = vmatpush3.msra.mxu1 %v2391_v39 }
 0x34d   :  { %836 = vmatprep.subr.mxu0 %v2348_v26  ;;  %1851 = vmatprep.subr.mxu1 %v3089_v0 }
 0x34e   :  { %837 = vmatpush1.msra.mxu0 %v2354_v28  ;;  %1852 = vmatpush3.msra.mxu1 %v2401_v42 }
 0x34f   :  { %838 = vmatprep.subr.mxu0 %v2358_v29  ;;  %1853 = vmatprep.subr.mxu1 %v3089_v0 }
 0x350   :  { %839 = vmatpush1.msra.mxu0 %v2364_v31  ;;  %1854 = vmatpush3.msra.mxu1 %v2411_v45 }
 0x351   :  { %840 = vmatprep.subr.mxu0 %v2368_v32  ;;  %1855 = vmatprep.subr.mxu1 %v3089_v0 }
 0x352   :  { %841 = vmatpush1.msra.mxu0 %v2374_v34  ;;  %1856 = vmatpush3.msra.mxu1 %v2417_v46 }
 0x353   :  { %842 = vmatprep.subr.mxu0 %v2378_v35  ;;  %1857 = vmatprep.subr.mxu1 %v3089_v0 }
 0x354   :  { %843 = vmatpush1.msra.mxu0 %v2384_v37  ;;  %1858 = vmatpush3.msra.mxu1 %v2422_v47 }
 0x355   :  { %844 = vmatprep.subr.mxu0 %v2388_v38  ;;  %1859 = vmatprep.subr.mxu1 %v3089_v0 }
 0x356   :  { %845 = vmatpush1.msra.mxu0 %v3097_v50  ;;  %1860 = vmatpush3.msra.mxu1 %v3098_v40 }
 0x357   :  { %846 = vmatprep.subr.mxu0 %v3099_v41  ;;  %1861 = vmatprep.subr.mxu1 %v3089_v0 }
 0x358   :  { %847 = vmatpush1.msra.mxu0 %v3100_v43  ;;  %880 = vmatprep.mubr.f32.mxu0 %v3089_v0  ;;  %v642_v43 = vld [vmem:[#allocation3 + $0x58] sm:$0xff] }
 0x359   :  { %1862 = vmatpush3.msra.mxu1 %v3101_v48  ;;  %1863 = vmatprep.mubr.msk.f32.mxu1 %vm2225_vm0, %v3089_v0 }
 0x35a   :  { %989 = vmatprep.subr.mxu0 %v3102_v49  ;;  %1866 = vmatprep.subr.mxu1 %v3089_v0 }
 0x3f9   :  { %v709_v51 = vpop.f32.mrf.mxu0  ;;  %v794_v55 = vpop.f32.mrf.mxu1 }
 0x3fa   :  { %v714_v57 = vadd.f32 %v709_v51, %v640_v59  ;;  %v795_v49 = vadd.f32 %v2508_v62, %v794_v55  ;;  %v2875_v55 = vld [vmem:[#allocation6 + $0xd8] sm:$0xff] }
 0x3fb   :  { %v1830_v58 = vpop.f32.mrf.mxu1  ;;  %v711_v61 = vpop.f32.mrf.mxu0 }
 0x3fc   :  { %v1545_v44 = vmul.f32 -1.442695, %v714_v57  ;;  %v721_v63 = vadd.f32 %v711_v61, %v641_v56  ;;  %v2878_v56 = vld [vmem:[#allocation6 + $0xe8] sm:$0xff] }
 0x3fd   :  { %v2881_v61 = vld [vmem:[#allocation6 + $0xc8] sm:$0xff] }
 0x3fe   :  { %2012 = vpow2.f32 %v1545_v44  ;;  %v1546_v1 = vmul.f32 -1.442695, %v721_v63  ;;  %v2885_v63 = vld [vmem:[#allocation6 + $0xc0] sm:$0xff] }
 0x400   :  { %2014 = vpow2.f32 %v1546_v1  ;;  %v2888_v1 = vld [vmem:[#allocation6 + $0xd0] sm:$0xff] }
 0x40b   :  { %v2013_v60 = vpop.eup %2012 }
 0x40c   :  { %v718_v52 = vadd.f32 1.0, %v2013_v60  ;;  %v2891_v60 = vld [vmem:[#allocation6 + $0xb0] sm:$0xff] }
 0x40d   :  { %v2015_v53 = vpop.eup %2014 }
 0x40e   :  { %2016 = vrcp.f32 %v718_v52  ;;  %v725_v50 = vadd.f32 1.0, %v2015_v53  ;;  %v2895_v52 = vld [vmem:[#allocation6 + $0xa8] sm:$0xff]  ;;  %v2898_v53 = vld [vmem:[#allocation6 + $0xb8] sm:$0xff] }
 0x41b   :  { %v2017_v48 = vpop.eup %2016 }
 0x41c   :  { %v798_v41 = vmul.f32 %v2017_v48, %v795_v49  ;;  %v2871_v48 = vld [vmem:[#allocation6 + $0xe0] sm:$0xff]  ;;  %v2901_v49 = vld [vmem:[#allocation6 + $0x98] sm:$0xff] }
 0x41e   :  { %v799_v40 = vadd.f32 %v798_v41, %v642_v43  ;;  %v2865_v41 = vld [vmem:[#allocation6 + $0xf0] sm:$0xff]  ;;  %v2868_v43 = vld [vmem:[#allocation6 + $0x100] sm:$0xff] }
 0x420   :  { %2018 = vtanh.f32 %v799_v40  ;;  %v2861_v40 = vld [vmem:[#allocation6 + $0xf8] sm:$0xff] }
 0x421   :  { %2020 = vrcp.f32 %v725_v50  ;;  %v2858_v50 = vld [vmem:[#allocation6 + $0x118] sm:$0xff] }
 0x42d   :  { %v2019_v59 = vpop.eup %2018 }
 0x42e   :  { %v801_v51 = vsub.f32 %v2660_v54, %v2019_v59  ;;  %v2021_v57 = vpop.eup %2020  ;;  %v2855_v54 = vld [vmem:[#allocation6 + $0x108] sm:$0xff] }
 0x430   :  { %v802_v58 = vmul.f32 %v2021_v57, %v801_v51  ;;  %v2908_v51 = vld [vmem:[#allocation6 + $0xa0] sm:$0xff] }
 0x431   :  { %v2911_v57 = vld [vmem:[#allocation6 + $0x80] sm:$0xff] }
 0x432   :  { %v2734_v44 = vadd.f32 %v2019_v59, %v802_v58  ;;  %v2905_v59 = vld [vmem:[#allocation6 + $0x90] sm:$0xff]  ;;  %v2915_v58 = vld [vmem:[#allocation6 + $0x78] sm:$0xff] }
 0x434   :  { %805 = vst [vmem:[#allocation9 + $0x18] sm:$0xff] %v2734_v44  ;;  %881 = vmatmul.mubr.f32.vlgmr.msra.gmra.mxu0 %v2734_v44  ;;  %1864 = vmatmul.mubr.f32.vlgmr.msra.gmra.mxu1 %v2734_v44 }
 0x435   :  { %990 = vmatpush1.msra.mxu0 %v2275_v2  ;;  %1867 = vmatpush3.msra.mxu1 %v2309_v14  ;;  %v3103_v2 = vld [vmem:[#allocation17_spill] sm:$0xff]  ;;  %v814_v14 = vld [vmem:[#allocation3 + $0x68] sm:$0xff] }
 0x436   :  { %991 = vmatprep.subr.mxu0 %v2277_v3  ;;  %1868 = vmatprep.subr.mxu1 %v3089_v0  ;;  %v3104_v3 = vld [vmem:[#allocation20_spill] sm:$0xff] }
 0x437   :  { %992 = vmatpush1.msra.mxu0 %v2280_v4  ;;  %1869 = vmatpush3.msra.mxu1 %v2315_v16  ;;  %v3105_v4 = vld [vmem:[#allocation18_spill] sm:$0xff] }
 0x438   :  { %993 = vmatprep.subr.mxu0 %v2283_v5  ;;  %1870 = vmatprep.subr.mxu1 %v3089_v0  ;;  %v3106_v5 = vld [vmem:[#allocation19_spill] sm:$0xff] }
 0x439   :  { %994 = vmatpush1.msra.mxu0 %v2286_v6  ;;  %1871 = vmatpush3.msra.mxu1 %v2321_v18  ;;  %v3107_v6 = vld [vmem:[#allocation21_spill] sm:$0xff] }
 0x43a   :  { %995 = vmatprep.subr.mxu0 %v2289_v7  ;;  %1872 = vmatprep.subr.mxu1 %v3089_v0  ;;  %v2804_v7 = vld [vmem:[#allocation6 + $0x170] sm:$0xff] }
 0x43b   :  { %996 = vmatpush1.msra.mxu0 %v2292_v8  ;;  %1873 = vmatpush3.msra.mxu1 %v2331_v21  ;;  %v813_v8 = vld [vmem:[#allocation3 + $0x60] sm:$0xff] }
 0x43c   :  { %997 = vmatprep.subr.mxu0 %v2295_v9  ;;  %1874 = vmatprep.subr.mxu1 %v3089_v0 }
 0x43d   :  { %998 = vmatpush1.msra.mxu0 %v2298_v10  ;;  %1875 = vmatpush3.msra.mxu1 %v2341_v24 }
 0x43e   :  { %999 = vmatprep.subr.mxu0 %v2301_v11  ;;  %1876 = vmatprep.subr.mxu1 %v3089_v0 }
 0x43f   :  { %1000 = vmatpush1.msra.mxu0 %v2304_v12  ;;  %1877 = vmatpush3.msra.mxu1 %v2351_v27 }
 0x440   :  { %1001 = vmatprep.subr.mxu0 %v2307_v13  ;;  %1878 = vmatprep.subr.mxu1 %v3089_v0 }
 0x441   :  { %1002 = vmatpush1.msra.mxu0 %v2312_v15  ;;  %1879 = vmatpush3.msra.mxu1 %v2361_v30 }
 0x442   :  { %1003 = vmatprep.subr.mxu0 %v2318_v17  ;;  %1880 = vmatprep.subr.mxu1 %v3089_v0 }
 0x443   :  { %1004 = vmatpush1.msra.mxu0 %v2324_v19  ;;  %1881 = vmatpush3.msra.mxu1 %v2371_v33  ;;  %v2818_v33 = vld [vmem:[#allocation6 + $0x178] sm:$0xff] }
 0x444   :  { %1005 = vmatprep.subr.mxu0 %v2328_v20  ;;  %1882 = vmatprep.subr.mxu1 %v3089_v0 }
 0x445   :  { %1006 = vmatpush1.msra.mxu0 %v2334_v22  ;;  %1883 = vmatpush3.msra.mxu1 %v2381_v36  ;;  %v2828_v36 = vld [vmem:[#allocation6 + $0x160] sm:$0xff] }
 0x446   :  { %1007 = vmatprep.subr.mxu0 %v2338_v23  ;;  %1884 = vmatprep.subr.mxu1 %v3089_v0  ;;  %v815_v23 = vld [vmem:[#allocation3 + $0x70] sm:$0xff] }
 0x447   :  { %1008 = vmatpush1.msra.mxu0 %v2344_v25  ;;  %1885 = vmatpush3.msra.mxu1 %v2391_v39  ;;  %v2838_v39 = vld [vmem:[#allocation6 + $0x148] sm:$0xff] }
 0x448   :  { %1009 = vmatprep.subr.mxu0 %v2348_v26  ;;  %1886 = vmatprep.subr.mxu1 %v3089_v0 }
 0x449   :  { %1010 = vmatpush1.msra.mxu0 %v2354_v28  ;;  %1887 = vmatpush3.msra.mxu1 %v2401_v42  ;;  %v2841_v42 = vld [vmem:[#allocation6 + $0x128] sm:$0xff] }
 0x44a   :  { %1011 = vmatprep.subr.mxu0 %v2358_v29  ;;  %1888 = vmatprep.subr.mxu1 %v3089_v0 }
 0x44b   :  { %1012 = vmatpush1.msra.mxu0 %v2364_v31  ;;  %1889 = vmatpush3.msra.mxu1 %v2411_v45  ;;  %v2845_v45 = vld [vmem:[#allocation6 + $0x120] sm:$0xff] }
 0x44c   :  { %1013 = vmatprep.subr.mxu0 %v2368_v32  ;;  %1890 = vmatprep.subr.mxu1 %v3089_v0  ;;  %v2815_v32 = vld [vmem:[#allocation6 + $0x168] sm:$0xff] }
 0x44d   :  { %1014 = vmatpush1.msra.mxu0 %v2374_v34  ;;  %1891 = vmatpush3.msra.mxu1 %v2417_v46  ;;  %v2821_v34 = vld [vmem:[#allocation6 + $0x158] sm:$0xff]  ;;  %v2848_v46 = vld [vmem:[#allocation6 + $0x130] sm:$0xff] }
 0x44e   :  { %1015 = vmatprep.subr.mxu0 %v2378_v35  ;;  %1892 = vmatprep.subr.mxu1 %v3089_v0  ;;  %v2825_v35 = vld [vmem:[#allocation6 + $0x150] sm:$0xff] }
 0x44f   :  { %1016 = vmatpush1.msra.mxu0 %v2384_v37  ;;  %1893 = vmatpush3.msra.mxu1 %v2422_v47  ;;  %v2831_v37 = vld [vmem:[#allocation6 + $0x140] sm:$0xff]  ;;  %v2851_v47 = vld [vmem:[#allocation6 + $0x110] sm:$0xff] }
 0x450   :  { %1017 = vmatprep.subr.mxu0 %v2388_v38  ;;  %1894 = vmatprep.subr.mxu1 %v3089_v0  ;;  %v2835_v38 = vld [vmem:[#allocation6 + $0x138] sm:$0xff] }
 0x451   :  { %1018 = vmatpush1.msra.mxu0 %v3103_v2  ;;  %1895 = vmatpush3.msra.mxu1 %v3104_v3  ;;  %v2921_v2 = vld [vmem:[#allocation6 + $0x68] sm:$0xff]  ;;  %v2925_v3 = vld [vmem:[#allocation6 + $0x60] sm:$0xff] }
 0x452   :  { %1019 = vmatprep.subr.mxu0 %v3105_v4  ;;  %1896 = vmatprep.subr.mxu1 %v3089_v0  ;;  %v2928_v4 = vld [vmem:[#allocation6 + $0x70] sm:$0xff] }
 0x453   :  { %1020 = vmatpush1.msra.mxu0 %v3106_v5  ;;  %1053 = vmatprep.mubr.f32.mxu0 %v3089_v0  ;;  %v2931_v5 = vld [vmem:[#allocation6 + $0x50] sm:$0xff] }
 0x454   :  { %1897 = vmatpush3.msra.mxu1 %v3107_v6  ;;  %1898 = vmatprep.mubr.msk.f32.mxu1 %vm2225_vm0, %v3089_v0  ;;  %v2935_v6 = vld [vmem:[#allocation6 + $0x48] sm:$0xff] }
 0x455   :  { %1162 = vmatprep.subr.mxu0 %v2804_v7  ;;  %1901 = vmatprep.subr.mxu1 %v3089_v0 }
 0x4f4   :  { %v882_v9 = vpop.f32.mrf.mxu0  ;;  %v967_v10 = vpop.f32.mrf.mxu1 }
 0x4f5   :  { %v887_v11 = vadd.f32 %v882_v9, %v813_v8  ;;  %v968_v21 = vadd.f32 %v2508_v62, %v967_v10  ;;  %v2938_v8 = vld [vmem:[#allocation6 + $0x58] sm:$0xff]  ;;  %v2945_v10 = vld [vmem:[#allocation6 + $0x30] sm:$0xff] }
 0x4f6   :  { %v1865_v12 = vpop.f32.mrf.mxu1  ;;  %v884_v15 = vpop.f32.mrf.mxu0  ;;  %v2941_v9 = vld [vmem:[#allocation6 + $0x38] sm:$0xff] }
 0x4f7   :  { %v1547_v13 = vmul.f32 -1.442695, %v887_v11  ;;  %v894_v16 = vadd.f32 %v884_v15, %v814_v14  ;;  %v2948_v11 = vld [vmem:[#allocation6 + $0x40] sm:$0xff]  ;;  %v2958_v14 = vld [vmem:[#allocation6 + $0x28] sm:$0xff] }
 0x4f8   :  { %v2951_v12 = vld [vmem:[#allocation6 + $0x20] sm:$0xff]  ;;  %3109 = vst [vmem:[#allocation17_spill] sm:$0xff] %v2958_v14  ;;  %v2961_v15 = vld [vmem:[#allocation6 + $0x8] sm:$0xff] }
 0x4f9   :  { %2022 = vpow2.f32 %v1547_v13  ;;  %v1548_v17 = vmul.f32 -1.442695, %v894_v16  ;;  %v2955_v13 = vld [vmem:[#allocation6 + $0x18] sm:$0xff]  ;;  %3110 = vst [vmem:[#allocation20_spill] sm:$0xff] %v2961_v15  ;;  %v2965_v16 = vld [vmem:[#allocation6] sm:$0xff] }
 0x4fa   :  { %3108 = vst [vmem:[#allocation16_spill] sm:$0xff] %v2955_v13  ;;  %3111 = vst [vmem:[#allocation18_spill] sm:$0xff] %v2965_v16 }
 0x4fb   :  { %2024 = vpow2.f32 %v1548_v17  ;;  %v2969_v17 = vld [vmem:[#allocation6 + $0x10] sm:$0xff] }
 0x4fc   :  { %3112 = vst [vmem:[#allocation19_spill] sm:$0xff] %v2969_v17 }
 0x506   :  { %v2023_v18 = vpop.eup %2022 }
 0x507   :  { %v891_v19 = vadd.f32 1.0, %v2023_v18  ;;  %v986_v18 = vld [vmem:[#allocation3 + $0x78] sm:$0xff] }
 0x508   :  { %v2025_v20 = vpop.eup %2024 }
 0x509   :  { %2026 = vrcp.f32 %v891_v19  ;;  %v898_v26 = vadd.f32 1.0, %v2025_v20 }
 0x516   :  { %v2027_v22 = vpop.eup %2026 }
 0x517   :  { %v971_v24 = vmul.f32 %v2027_v22, %v968_v21 }
 0x519   :  { %v972_v25 = vadd.f32 %v971_v24, %v815_v23  ;;  %v987_v24 = vld [vmem:[#allocation3 + $0x80] sm:$0xff] }
 0x51b   :  { %2028 = vtanh.f32 %v972_v25 }
 0x51c   :  { %2030 = vrcp.f32 %v898_v26 }
 0x528   :  { %v2029_v27 = vpop.eup %2028 }
 0x529   :  { %v974_v28 = vsub.f32 %v2734_v44, %v2029_v27  ;;  %v2031_v29 = vpop.eup %2030  ;;  %v2918_v44 = vld [vmem:[#allocation6 + $0x88] sm:$0xff] }
 0x52b   :  { %v975_v30 = vmul.f32 %v2031_v29, %v974_v28 }
 0x52d   :  { %v2810_v31 = vadd.f32 %v2029_v27, %v975_v30 }
 0x52f   :  { %978 = vst [vmem:[#allocation9 + $0x20] sm:$0xff] %v2810_v31  ;;  %1054 = vmatmul.mubr.f32.vlgmr.msra.gmra.mxu0 %v2810_v31  ;;  %1899 = vmatmul.mubr.f32.vlgmr.msra.gmra.mxu1 %v2810_v31 }
 0x530   :  { %1163 = vmatpush1.msra.mxu0 %v2815_v32  ;;  %1902 = vmatpush3.msra.mxu1 %v2818_v33 }
 0x531   :  { %1164 = vmatprep.subr.mxu0 %v2821_v34  ;;  %1903 = vmatprep.subr.mxu1 %v3089_v0 }
 0x532   :  { %1165 = vmatpush1.msra.mxu0 %v2825_v35  ;;  %1904 = vmatpush3.msra.mxu1 %v2828_v36 }
 0x533   :  { %1166 = vmatprep.subr.mxu0 %v2831_v37  ;;  %1905 = vmatprep.subr.mxu1 %v3089_v0 }
 0x534   :  { %1167 = vmatpush1.msra.mxu0 %v2835_v38  ;;  %1906 = vmatpush3.msra.mxu1 %v2838_v39 }
 0x535   :  { %1168 = vmatprep.subr.mxu0 %v2841_v42  ;;  %1907 = vmatprep.subr.mxu1 %v3089_v0 }
 0x536   :  { %1169 = vmatpush1.msra.mxu0 %v2845_v45  ;;  %1908 = vmatpush3.msra.mxu1 %v2848_v46 }
 0x537   :  { %1170 = vmatprep.subr.mxu0 %v2851_v47  ;;  %1909 = vmatprep.subr.mxu1 %v3089_v0 }
 0x538   :  { %1171 = vmatpush1.msra.mxu0 %v2855_v54  ;;  %1910 = vmatpush3.msra.mxu1 %v2858_v50 }
 0x539   :  { %1172 = vmatprep.subr.mxu0 %v2861_v40  ;;  %1911 = vmatprep.subr.mxu1 %v3089_v0 }
 0x53a   :  { %1173 = vmatpush1.msra.mxu0 %v2865_v41  ;;  %1912 = vmatpush3.msra.mxu1 %v2868_v43 }
 0x53b   :  { %1174 = vmatprep.subr.mxu0 %v2871_v48  ;;  %1913 = vmatprep.subr.mxu1 %v3089_v0 }
 0x53c   :  { %1175 = vmatpush1.msra.mxu0 %v2875_v55  ;;  %1914 = vmatpush3.msra.mxu1 %v2878_v56 }
 0x53d   :  { %1176 = vmatprep.subr.mxu0 %v2881_v61  ;;  %1915 = vmatprep.subr.mxu1 %v3089_v0 }
 0x53e   :  { %1177 = vmatpush1.msra.mxu0 %v2885_v63  ;;  %1916 = vmatpush3.msra.mxu1 %v2888_v1 }
 0x53f   :  { %1178 = vmatprep.subr.mxu0 %v2891_v60  ;;  %1917 = vmatprep.subr.mxu1 %v3089_v0 }
 0x540   :  { %1179 = vmatpush1.msra.mxu0 %v2895_v52  ;;  %1918 = vmatpush3.msra.mxu1 %v2898_v53 }
 0x541   :  { %1180 = vmatprep.subr.mxu0 %v2901_v49  ;;  %1919 = vmatprep.subr.mxu1 %v3089_v0 }
 0x542   :  { %1181 = vmatpush1.msra.mxu0 %v2905_v59  ;;  %1920 = vmatpush3.msra.mxu1 %v2908_v51 }
 0x543   :  { %1182 = vmatprep.subr.mxu0 %v2911_v57  ;;  %1921 = vmatprep.subr.mxu1 %v3089_v0 }
 0x544   :  { %1183 = vmatpush1.msra.mxu0 %v2915_v58  ;;  %1922 = vmatpush3.msra.mxu1 %v2918_v44 }
 0x545   :  { %1184 = vmatprep.subr.mxu0 %v2921_v2  ;;  %1923 = vmatprep.subr.mxu1 %v3089_v0 }
 0x546   :  { %1185 = vmatpush1.msra.mxu0 %v2925_v3  ;;  %1924 = vmatpush3.msra.mxu1 %v2928_v4 }
 0x547   :  { %1186 = vmatprep.subr.mxu0 %v2931_v5  ;;  %1925 = vmatprep.subr.mxu1 %v3089_v0 }
 0x548   :  { %1187 = vmatpush1.msra.mxu0 %v2935_v6  ;;  %1926 = vmatpush3.msra.mxu1 %v2938_v8 }
 0x549   :  { %1188 = vmatprep.subr.mxu0 %v2941_v9  ;;  %1927 = vmatprep.subr.mxu1 %v3089_v0 }
 0x54a   :  { %1189 = vmatpush1.msra.mxu0 %v2945_v10  ;;  %1928 = vmatpush3.msra.mxu1 %v2948_v11 }
 0x54b   :  { %1190 = vmatprep.subr.mxu0 %v2951_v12  ;;  %1929 = vmatprep.subr.mxu1 %v3089_v0 }
 0x54c   :  { %1191 = vmatpush1.msra.mxu0 %v2955_v13  ;;  %1930 = vmatpush3.msra.mxu1 %v2958_v14 }
 0x54d   :  { %1192 = vmatprep.subr.mxu0 %v2961_v15  ;;  %1931 = vmatprep.subr.mxu1 %v3089_v0 }
 0x54e   :  { %1193 = vmatpush1.msra.mxu0 %v2965_v16  ;;  %1226 = vmatprep.mubr.f32.mxu0 %v3089_v0  ;;  %v988_v16 = vld [vmem:[#allocation3 + $0x88] sm:$0xff] }
 0x54f   :  { %1932 = vmatpush3.msra.mxu1 %v2969_v17  ;;  %1933 = vmatprep.mubr.msk.f32.mxu1 %vm2225_vm0, %v3089_v0 }
 0x550   :  { %1335 = vmatprep.subr.mxu0 %v2804_v7  ;;  %1936 = vmatprep.subr.mxu1 %v3089_v0 }
 0x5ef   :  { %v1055_v19 = vpop.f32.mrf.mxu0  ;;  %v1140_v20 = vpop.f32.mrf.mxu1 }
 0x5f0   :  { %v1060_v21 = vadd.f32 %v1055_v19, %v986_v18  ;;  %v1141_v7 = vadd.f32 %v2508_v62, %v1140_v20  ;;  %v3113_v62 = vld [vmem:[#allocation16_spill] sm:$0xff] }
 0x5f1   :  { %v1900_v22 = vpop.f32.mrf.mxu1  ;;  %v1057_v25 = vpop.f32.mrf.mxu0 }
 0x5f2   :  { %v1549_v23 = vmul.f32 -1.442695, %v1060_v21  ;;  %v1067_v26 = vadd.f32 %v1057_v25, %v987_v24 }
 0x5f4   :  { %2032 = vpow2.f32 %v1549_v23  ;;  %v1550_v27 = vmul.f32 -1.442695, %v1067_v26 }
 0x5f6   :  { %2034 = vpow2.f32 %v1550_v27 }
 0x601   :  { %v2033_v28 = vpop.eup %2032 }
 0x602   :  { %v1064_v29 = vadd.f32 1.0, %v2033_v28 }
 0x603   :  { %v2035_v30 = vpop.eup %2034 }
 0x604   :  { %2036 = vrcp.f32 %v1064_v29  ;;  %v1071_v13 = vadd.f32 1.0, %v2035_v30 }
 0x611   :  { %v2037_v17 = vpop.eup %2036 }
 0x612   :  { %v1144_v15 = vmul.f32 %v2037_v17, %v1141_v7 }
 0x614   :  { %v1145_v14 = vadd.f32 %v1144_v15, %v988_v16 }
 0x616   :  { %2038 = vtanh.f32 %v1145_v14 }
 0x617   :  { %2040 = vrcp.f32 %v1071_v13  ;;  %v1334_v13 = vld [vmem:[#allocation3 + $0xb8] sm:$0xff] }
 0x623   :  { %v2039_v18 = vpop.eup %2038 }
 0x624   :  { %v1147_v19 = vsub.f32 %v2810_v31, %v2039_v18  ;;  %v2041_v21 = vpop.eup %2040  ;;  %v3114_v31 = vld [vmem:[#allocation17_spill] sm:$0xff] }
 0x626   :  { %v1148_v22 = vmul.f32 %v2041_v21, %v1147_v19 }
 0x628   :  { %v2978_v23 = vadd.f32 %v2039_v18, %v1148_v22 }
 0x62a   :  { %1151 = vst [vmem:[#allocation9 + $0x28] sm:$0xff] %v2978_v23  ;;  %1227 = vmatmul.mubr.f32.vlgmr.msra.gmra.mxu0 %v2978_v23  ;;  %1934 = vmatmul.mubr.f32.vlgmr.msra.gmra.mxu1 %v2978_v23 }
 0x62b   :  { %1336 = vmatpush1.msra.mxu0 %v2815_v32  ;;  %1937 = vmatpush3.msra.mxu1 %v2818_v33  ;;  %v3115_v32 = vld [vmem:[#allocation20_spill] sm:$0xff]  ;;  %v3116_v33 = vld [vmem:[#allocation18_spill] sm:$0xff] }
 0x62c   :  { %1337 = vmatprep.subr.mxu0 %v2821_v34  ;;  %1938 = vmatprep.subr.mxu1 %v3089_v0  ;;  %v3117_v34 = vld [vmem:[#allocation19_spill] sm:$0xff] }
 0x62d   :  { %1338 = vmatpush1.msra.mxu0 %v2825_v35  ;;  %1939 = vmatpush3.msra.mxu1 %v2828_v36  ;;  %v1159_v35 = vld [vmem:[#allocation3 + $0x90] sm:$0xff] }
 0x62e   :  { %1339 = vmatprep.subr.mxu0 %v2831_v37  ;;  %1940 = vmatprep.subr.mxu1 %v3089_v0 }
 0x62f   :  { %1340 = vmatpush1.msra.mxu0 %v2835_v38  ;;  %1941 = vmatpush3.msra.mxu1 %v2838_v39 }
 0x630   :  { %1341 = vmatprep.subr.mxu0 %v2841_v42  ;;  %1942 = vmatprep.subr.mxu1 %v3089_v0 }
 0x631   :  { %1342 = vmatpush1.msra.mxu0 %v2845_v45  ;;  %1943 = vmatpush3.msra.mxu1 %v2848_v46  ;;  %v1160_v45 = vld [vmem:[#allocation3 + $0x98] sm:$0xff] }
 0x632   :  { %1343 = vmatprep.subr.mxu0 %v2851_v47  ;;  %1944 = vmatprep.subr.mxu1 %v3089_v0 }
 0x633   :  { %1344 = vmatpush1.msra.mxu0 %v2855_v54  ;;  %1945 = vmatpush3.msra.mxu1 %v2858_v50 }
 0x634   :  { %1345 = vmatprep.subr.mxu0 %v2861_v40  ;;  %1946 = vmatprep.subr.mxu1 %v3089_v0 }
 0x635   :  { %1346 = vmatpush1.msra.mxu0 %v2865_v41  ;;  %1947 = vmatpush3.msra.mxu1 %v2868_v43 }
 0x636   :  { %1347 = vmatprep.subr.mxu0 %v2871_v48  ;;  %1948 = vmatprep.subr.mxu1 %v3089_v0 }
 0x637   :  { %1348 = vmatpush1.msra.mxu0 %v2875_v55  ;;  %1949 = vmatpush3.msra.mxu1 %v2878_v56  ;;  %v1161_v55 = vld [vmem:[#allocation3 + $0xa0] sm:$0xff] }
 0x638   :  { %1349 = vmatprep.subr.mxu0 %v2881_v61  ;;  %1950 = vmatprep.subr.mxu1 %v3089_v0 }
 0x639   :  { %1350 = vmatpush1.msra.mxu0 %v2885_v63  ;;  %1951 = vmatpush3.msra.mxu1 %v2888_v1 }
 0x63a   :  { %1351 = vmatprep.subr.mxu0 %v2891_v60  ;;  %1952 = vmatprep.subr.mxu1 %v3089_v0 }
 0x63b   :  { %1352 = vmatpush1.msra.mxu0 %v2895_v52  ;;  %1953 = vmatpush3.msra.mxu1 %v2898_v53 }
 0x63c   :  { %1353 = vmatprep.subr.mxu0 %v2901_v49  ;;  %1954 = vmatprep.subr.mxu1 %v3089_v0 }
 0x63d   :  { %1354 = vmatpush1.msra.mxu0 %v2905_v59  ;;  %1955 = vmatpush3.msra.mxu1 %v2908_v51  ;;  %v1332_v59 = vld [vmem:[#allocation3 + $0xa8] sm:$0xff] }
 0x63e   :  { %1355 = vmatprep.subr.mxu0 %v2911_v57  ;;  %1956 = vmatprep.subr.mxu1 %v3089_v0 }
 0x63f   :  { %1356 = vmatpush1.msra.mxu0 %v2915_v58  ;;  %1957 = vmatpush3.msra.mxu1 %v2918_v44 }
 0x640   :  { %1357 = vmatprep.subr.mxu0 %v2921_v2  ;;  %1958 = vmatprep.subr.mxu1 %v3089_v0 }
 0x641   :  { %1358 = vmatpush1.msra.mxu0 %v2925_v3  ;;  %1959 = vmatpush3.msra.mxu1 %v2928_v4  ;;  %v1333_v3 = vld [vmem:[#allocation3 + $0xb0] sm:$0xff] }
 0x642   :  { %1359 = vmatprep.subr.mxu0 %v2931_v5  ;;  %1960 = vmatprep.subr.mxu1 %v3089_v0 }
 0x643   :  { %1360 = vmatpush1.msra.mxu0 %v2935_v6  ;;  %1961 = vmatpush3.msra.mxu1 %v2938_v8 }
 0x644   :  { %1361 = vmatprep.subr.mxu0 %v2941_v9  ;;  %1962 = vmatprep.subr.mxu1 %v3089_v0 }
 0x645   :  { %1362 = vmatpush1.msra.mxu0 %v2945_v10  ;;  %1963 = vmatpush3.msra.mxu1 %v2948_v11 }
 0x646   :  { %1363 = vmatprep.subr.mxu0 %v2951_v12  ;;  %1964 = vmatprep.subr.mxu1 %v3089_v0 }
 0x647   :  { %1364 = vmatpush1.msra.mxu0 %v3113_v62  ;;  %1965 = vmatpush3.msra.mxu1 %v3114_v31 }
 0x648   :  { %1365 = vmatprep.subr.mxu0 %v3115_v32  ;;  %1966 = vmatprep.subr.mxu1 %v3089_v0 }
 0x649   :  { %1366 = vmatpush1.msra.mxu0 %v3116_v33  ;;  %1399 = vmatprep.mubr.f32.mxu0 %v3089_v0 }
 0x64a   :  { %1967 = vmatpush3.msra.mxu1 %v3117_v34  ;;  %1968 = vmatprep.mubr.msk.f32.mxu1 %vm2225_vm0, %v3089_v0  ;;  %v2110_v0 = vld [vmem:[%s3060_s2] ss:$0 sm:$0xff]  ;;  %s2226_s2 = smov [#allocation9]  }
 0x64b   :  { %s1511_s11 = sshll.u32 %s2226_s2, 4  ;;  %s1512_s11 = int_to_ptr.vmem [resolvable:$true] %s1511_s11 }
 0x64c   :  { %s2171_s14 = scalar_lea.vmem %s1512_s11, 1024  ;;  %p2176_p2 = scmp.lt.s32.totalorder %s1512_s11, %s1512_s11 }
 0x64d   :  { %p2172_p1 = scmp.ne.s32.totalorder %s1512_s11, %s2171_s14  ;;  %p2177_p3 = scmp.lt.s32.totalorder %s2171_s14, %s2171_s14 }
 0x64f   :  { %p2178_p4 = por %p2177_p3, %p2176_p2 }
 0x651   :  { %p2179_p5 = pnand %p2178_p4, %p2172_p1 }
 0x6ea   :  { %v1228_v36 = vpop.f32.mrf.mxu0  ;;  %v1313_v37 = vpop.f32.mrf.mxu1 }
 0x6eb   :  { %v1233_v38 = vadd.f32 %v1228_v36, %v1159_v35  ;;  %v1314_v43 = vadd.f32 %v2110_v0, %v1313_v37 }
 0x6ec   :  { %v1935_v39 = vpop.f32.mrf.mxu1  ;;  %v1230_v46 = vpop.f32.mrf.mxu0 }
 0x6ed   :  { %v1551_v42 = vmul.f32 -1.442695, %v1233_v38  ;;  %v1240_v47 = vadd.f32 %v1230_v46, %v1160_v45 }
 0x6ef   :  { %2042 = vpow2.f32 %v1551_v42  ;;  %v1552_v54 = vmul.f32 -1.442695, %v1240_v47 }
 0x6f1   :  { %2044 = vpow2.f32 %v1552_v54 }
 0x6fc   :  { %v2043_v50 = vpop.eup %2042 }
 0x6fd   :  { %v1237_v40 = vadd.f32 1.0, %v2043_v50 }
 0x6fe   :  { %v2045_v41 = vpop.eup %2044 }
 0x6ff   :  { %2046 = vrcp.f32 %v1237_v40  ;;  %v1244_v63 = vadd.f32 1.0, %v2045_v41 }
 0x70c   :  { %v2047_v48 = vpop.eup %2046 }
 0x70d   :  { %v1317_v56 = vmul.f32 %v2047_v48, %v1314_v43 }
 0x70f   :  { %v1318_v61 = vadd.f32 %v1317_v56, %v1161_v55 }
 0x711   :  { %2048 = vtanh.f32 %v1318_v61 }
 0x712   :  { %2050 = vrcp.f32 %v1244_v63 }
 0x71e   :  { %v2049_v1 = vpop.eup %2048 }
 0x71f   :  { %v1320_v60 = vsub.f32 %v2978_v23, %v2049_v1  ;;  %v2051_v52 = vpop.eup %2050 }
 0x721   :  { %v1321_v53 = vmul.f32 %v2051_v52, %v1320_v60 }
 0x723   :  { %v1322_v49 = vadd.f32 %v2049_v1, %v1321_v53 }
 0x725   :  { %1324 = vst [vmem:[#allocation9 + $0x30] sm:$0xff] %v1322_v49  ;;  %1400 = vmatmul.mubr.f32.vlgmr.msra.gmra.mxu0 %v1322_v49  ;;  %1969 = vmatmul.mubr.f32.vlgmr.msra.gmra.mxu1 %v1322_v49 }
 0x7e5   :  { %v1401_v51 = vpop.f32.mrf.mxu0  ;;  %v1486_v57 = vpop.f32.mrf.mxu1 }
 0x7e6   :  { %v1406_v58 = vadd.f32 %v1401_v51, %v1332_v59  ;;  %v1487_v11 = vadd.f32 %v2110_v0, %v1486_v57 }
 0x7e7   :  { %v1970_v44 = vpop.f32.mrf.mxu1  ;;  %v1403_v4 = vpop.f32.mrf.mxu0 }
 0x7e8   :  { %v1553_v2 = vmul.f32 -1.442695, %v1406_v58  ;;  %v1413_v5 = vadd.f32 %v1403_v4, %v1333_v3 }
 0x7ea   :  { %2052 = vpow2.f32 %v1553_v2  ;;  %v1554_v6 = vmul.f32 -1.442695, %v1413_v5 }
 0x7ec   :  { %2054 = vpow2.f32 %v1554_v6 }
 0x7f7   :  { %v2053_v8 = vpop.eup %2052 }
 0x7f8   :  { %v1410_v9 = vadd.f32 1.0, %v2053_v8 }
 0x7f9   :  { %v2055_v10 = vpop.eup %2054 }
 0x7fa   :  { %2056 = vrcp.f32 %v1410_v9  ;;  %v1417_v16 = vadd.f32 1.0, %v2055_v10 }
 0x807   :  { %v2057_v12 = vpop.eup %2056 }
 0x808   :  { %v1490_v14 = vmul.f32 %v2057_v12, %v1487_v11 }
 0x80a   :  { %v1491_v15 = vadd.f32 %v1490_v14, %v1334_v13 }
 0x80c   :  { %2058 = vtanh.f32 %v1491_v15 }
 0x80d   :  { %2060 = vrcp.f32 %v1417_v16 }
 0x819   :  { %v2059_v17 = vpop.eup %2058 }
 0x81a   :  { %v1493_v20 = vsub.f32 %v1322_v49, %v2059_v17  ;;  %v2061_v24 = vpop.eup %2060 }
 0x81c   :  { %v1494_v25 = vmul.f32 %v2061_v24, %v1493_v20 }
 0x81e   :  { %v1495_v26 = vadd.f32 %v2059_v17, %v1494_v25 }
 0x820   :  { %1497 = vst [vmem:[#allocation9 + $0x38] sm:$0xff] %v1495_v26  ;;  %1505 = vst [vmem:[#allocation10] sm:$0xff] %v1495_v26 }
 0x821   :  { %2182 = shalt.err (!%p2179_p5)
}
 0x822   :  { %s2228_s15 = smov 128   ;;  %s2229_s16 = smov 8  }
 0x823   :  { %1517 = dma.vmem_to_hbm [thread:$0]  %s1512_s11, 1024, %s3062_s4, [#allocation5], %s2228_s15, %s2228_s15, %s2229_s16  }
 0x824   :  { %s2191_s19 = scalar_lea.vmem %s1525_s13, 128  ;;  %p2196_p7 = scmp.lt.s32.totalorder %s1525_s13, %s1525_s13 }
 0x825   :  { %p2192_p6 = scmp.ne.s32.totalorder %s1525_s13, %s2191_s19  ;;  %p2197_p8 = scmp.lt.s32.totalorder %s2191_s19, %s2191_s19 }
 0x827   :  { %p2198_p9 = por %p2197_p8, %p2196_p7 }
 0x829   :  { %p2199_p10 = pnand %p2198_p9, %p2192_p6 }
 0x82b   :  { %2202 = shalt.err (!%p2199_p10)
}
 0x82c   :  { %1527 = dma.vmem_to_hbm [thread:$0]  %s1525_s13, 128, %s3063_s5, [#allocation11]  }
 0x82d   :  { %2215 = dma.done.wait [#allocation5], 1024  }
 0x82e   :  { %2216 = vsyncadd [#allocation5], 4294966272 }
 0x82f   :  { %2217 = dma.done.wait [#allocation11], 128  }
 0x830   :  { %2218 = vsyncadd [#allocation11], 4294967168 }
 0x831   :  { %1534 = vsyncpa [#allocation4], 1 }
 0x832   :  { %1535 = vsyncpa [#allocation7], 1 }
 0x833   :  { %1536 = vsyncpa [#allocation5], 1 }
 0x834   :  { %1537 = vsyncpa [#allocation11], 1 }

</bundles_post_ra>
